<compile_context>
chip_gen: v6e
topology: v6e:2x2x1
jax: 0.10.0
libtpu: 0.0.40
codegen_flags: <defaults>
</compile_context>

<pallas_src>
import jax
import jax.numpy as jnp
from jax.experimental import pallas as pl
from jax.experimental.pallas import tpu as pltpu


_LANE = 128      # vreg lane width
_SUBLANE = 8     # f32 sublane tile


def _round_up(x, m):
    return (x + m - 1) // m * m


def _make_pointnet_kernel(n_h_layers, n_g_layers, tb, pt_tile):
    """h-MLP on a (tb*pt_tile, d_in) point slab -> running max -> g-MLP at the last point tile."""

    def kernel(*refs):
        x_ref = refs[0]
        wb_refs = refs[1:1 + 2 * (n_h_layers + n_g_layers)]
        out_ref, pool_ref = refs[-2], refs[-1]
        h_refs = wb_refs[:2 * n_h_layers]
        g_refs = wb_refs[2 * n_h_layers:]

        j = pl.program_id(1)                      # point-tile (reduction) axis

        @pl.when(j == 0)
        def _init():
            pool_ref[...] = jnp.full(pool_ref.shape, -jnp.inf, dtype=pool_ref.dtype)

        # ---- h_mlp on the flattened (tb*pt_tile, d_in) slab: Linear, (ReLU, Linear)* ----
        d_in = x_ref.shape[-1]
        rows = tb * pt_tile
        x_slab = x_ref[...].reshape(rows, d_in)   # f32, true (sublane-rounded) feature dim
        y = None
        for i in range(n_h_layers):
            w = h_refs[2 * i][...]
            b = h_refs[2 * i + 1][...]            # (1, out_pad) f32
            if i == 0:
                # Tiny-K first layer stays f32: avoids padding the streamed input to
                # 128 lanes and keeps full input precision.  Negligible FLOPs.
                y = jnp.dot(x_slab, w, preferred_element_type=jnp.float32) + b
            else:
                a16 = jnp.maximum(y, 0.0).astype(jnp.bfloat16)   # bf16 inter-layer storage
                y = jnp.dot(a16, w, preferred_element_type=jnp.float32) + b

        # ---- running symmetric max over this point tile (torch.max(x, -2)), f32 ----
        feat = y.reshape(tb, pt_tile, y.shape[-1])
        pool_ref[...] = jnp.maximum(pool_ref[...], jnp.max(feat, axis=1))

        # ---- g_mlp on the pooled features, only once per batch tile ----
        @pl.when(j == pl.num_programs(1) - 1)
        def _finish():
            g = pool_ref[...]
            for i in range(n_g_layers):
                if i > 0:
                    g = jnp.maximum(g, 0.0)
                w = g_refs[2 * i][...]
                b = g_refs[2 * i + 1][...]
                g = jnp.dot(g.astype(jnp.bfloat16), w,
                            preferred_element_type=jnp.float32) + b
            out_ref[...] = g.astype(out_ref.dtype)   # lane-dense (tb, c_pad) store

    return kernel


def pointnet_forward(x, h_params, g_params, *, tb_target=64, rows_target=1024,
                     act_vmem_budget=12 * 1024 * 1024):
    """x: (B, N, input_dim) f32.  h_params / g_params: lists of (W(in,out) f32, b(1,out) f32)."""
    B, N, D = x.shape
    n_h, n_g = len(h_params), len(g_params)
    num_classes = g_params[-1][0].shape[1]

    if N % _SUBLANE != 0:
        # TODO(synk): support ragged N by masking padded point rows with -inf before the max-pool.
        raise ValueError("N must be a multiple of 8 for this kernel (pad points in the caller).")

    # ---- batch tile: cap by the real batch, keep >= 2 tiles for v7x megacore when cheap ----
    b_pad8 = _round_up(B, _SUBLANE)
    tb = min(b_pad8, _round_up(tb_target, _SUBLANE))
    if b_pad8 // tb < 2 and b_pad8 % (2 * _SUBLANE) == 0:
        tb = b_pad8 // 2          # two batch tiles -> both TensorCores on v7x, no extra padding
    b_pad = _round_up(B, tb)

    # ---- point tile: target ~rows_target slab rows, bounded by the activation VMEM budget ----
    d_in = _round_up(D, _SUBLANE)
    max_h_out_pad = max(_round_up(w.shape[1], _LANE) for (w, _) in h_params)
    bytes_per_row = 6 * max_h_out_pad + 4 * d_in + 64     # ~ f32 matmul out + bf16 in + x + slack
    rows_cap = max(_SUBLANE, int(act_vmem_budget) // bytes_per_row)
    rows = max(_SUBLANE, min(rows_target, rows_cap))
    pt_desired = max(_SUBLANE, rows // tb)
    pt_tile = _SUBLANE
    t = _SUBLANE
    upper = min(N, _round_up(pt_desired, _SUBLANE))
    while t <= upper:
        if N % t == 0:
            pt_tile = t
        t += _SUBLANE
    n_pt = N // pt_tile

    # ---- input: keep the true feature dim (no 128-lane HBM padding); pad only if needed ----
    x_p = x.astype(jnp.float32)
    if b_pad != B or d_in != D:
        x_p = jnp.pad(x_p, ((0, b_pad - B), (0, 0), (0, d_in - D)))

    # ---- weights: chain-padded (in_pad -> out_pad); first layer f32, the rest bf16 ----
    def pad_wb(w, b, in_pad, out_pad, w_dtype):
        fi, fo = w.shape
        w_p = jnp.zeros((in_pad, out_pad), jnp.float32).at[:fi, :fo].set(w).astype(w_dtype)
        b_p = jnp.zeros((1, out_pad), jnp.float32).at[:, :fo].set(b.reshape(1, -1))
        return w_p, b_p

    padded = []
    prev_out_pad = d_in
    for li, (w, b) in enumerate(list(h_params) + list(g_params)):
        out_pad = _round_up(w.shape[1], _LANE)
        w_dtype = jnp.float32 if li == 0 else jnp.bfloat16
        padded.append(pad_wb(w, b, prev_out_pad, out_pad, w_dtype))
        prev_out_pad = out_pad

    f_pad = padded[n_h - 1][0].shape[1]           # pooled-feature width (padded)
    c_pad = padded[-1][0].shape[1]                # logits width (padded)

    kernel = _make_pointnet_kernel(n_h, n_g, tb, pt_tile)
    grid = (b_pad // tb, n_pt)                    # reduction (point) axis last

    # ---- VMEM budget / cost estimate ----
    weight_bytes = sum(w.size * w.dtype.itemsize + b.size * b.dtype.itemsize
                       for (w, b) in padded)
    est_vmem = (2 * weight_bytes                       # conservative: as if double-buffered
                + 2 * tb * pt_tile * bytes_per_row     # h-MLP activation slab
                + 2 * tb * pt_tile * d_in * 4          # double-buffered x block
                + 2 * tb * c_pad * 4                   # double-buffered out block
                + tb * f_pad * 4)                      # running-max scratch
    vmem_limit = int(min(64 * 1024 * 1024, max(32 * 1024 * 1024, est_vmem)))

    flops = 2 * b_pad * N * sum(int(w.shape[0]) * int(w.shape[1]) for (w, _) in padded[:n_h])
    flops += 2 * b_pad * sum(int(w.shape[0]) * int(w.shape[1]) for (w, _) in padded[n_h:])
    bytes_accessed = int(x_p.size * x_p.dtype.itemsize + weight_bytes + b_pad * c_pad * 4)
    cost = pl.CostEstimate(flops=int(flops), transcendentals=0, bytes_accessed=bytes_accessed)

    def build(weight_pipeline_mode):
        in_specs = [pl.BlockSpec((tb, pt_tile, d_in), lambda i, j: (i, j, 0))]
        args = [x_p]
        for (w_p, b_p) in padded:
            # Grid-invariant operands (constant index_map -> fetched once).  Single-buffer
            # them when the toolchain supports pipeline_mode to halve resident weight VMEM.
            if weight_pipeline_mode is None:
                in_specs.append(pl.BlockSpec(w_p.shape, lambda i, j: (0, 0)))
                in_specs.append(pl.BlockSpec(b_p.shape, lambda i, j: (0, 0)))
            else:
                in_specs.append(pl.BlockSpec(w_p.shape, lambda i, j: (0, 0),
                                             pipeline_mode=weight_pipeline_mode))
                in_specs.append(pl.BlockSpec(b_p.shape, lambda i, j: (0, 0),
                                             pipeline_mode=weight_pipeline_mode))
            args.append(w_p)
            args.append(b_p)

        out_spec = pl.BlockSpec((tb, c_pad), lambda i, j: (i, 0))

        call = pl.pallas_call(
            kernel,
            out_shape=jax.ShapeDtypeStruct((b_pad, c_pad), jnp.float32),
            grid_spec=pltpu.PrefetchScalarGridSpec(
                num_scalar_prefetch=0,
                grid=grid,
                in_specs=in_specs,
                out_specs=out_spec,
                scratch_shapes=[pltpu.VMEM((tb, f_pad), jnp.float32)],   # running max
            ),
            compiler_params=pltpu.CompilerParams(
                # batch axis shards across the 2 v7x TensorCores; point axis is a reduction
                dimension_semantics=("parallel", "arbitrary"),
                vmem_limit_bytes=vmem_limit,
            ),
            cost_estimate=cost,
        )
        return call, args

    try:
        call, args = build(pl.Buffered(1))        # single-buffered constant weights
        out_padded = call(*args)
    except Exception:                             # pipeline_mode unsupported -> default buffering
        call, args = build(None)
        out_padded = call(*args)

    return out_padded[:B, :num_classes]


def init_linear(key, fan_in, fan_out):
    """Deterministic init matching nn.Linear's uniform(-1/sqrt(fan_in), 1/sqrt(fan_in))."""
    kw, kb = jax.random.split(key)
    bound = 1.0 / jnp.sqrt(jnp.float32(fan_in))
    w = jax.random.uniform(kw, (fan_in, fan_out), jnp.float32, -bound, bound)
    b = jax.random.uniform(kb, (1, fan_out), jnp.float32, -bound, bound)
    return w, b


def build_params(key, input_dim, h_dims, g_dims, num_classes):
    # h_mlp linear sizes: input_dim -> h_dims[0] -> ... -> h_dims[-1]
    h_sizes = [input_dim] + list(h_dims)
    # g_mlp linear sizes: h_dims[-1] -> g_dims[0] -> ... -> g_dims[-1] -> num_classes
    g_sizes = [h_dims[-1]] + list(g_dims) + [num_classes]

    keys = jax.random.split(key, (len(h_sizes) - 1) + (len(g_sizes) - 1))
    h_params, g_params = [], []
    ki = 0
    for i in range(len(h_sizes) - 1):
        h_params.append(init_linear(keys[ki], h_sizes[i], h_sizes[i + 1]))
        ki += 1
    for i in range(len(g_sizes) - 1):
        g_params.append(init_linear(keys[ki], g_sizes[i], g_sizes[i + 1]))
        ki += 1
    return h_params, g_params


def pointnet_reference(x, h_params, g_params):
    """Pure-JAX f32 reference mirroring the PyTorch forward exactly."""
    h = x
    for i, (w, b) in enumerate(h_params):
        if i > 0:
            h = jnp.maximum(h, 0.0)
        h = h @ w + b
    g = jnp.max(h, axis=-2)
    for i, (w, b) in enumerate(g_params):
        if i > 0:
            g = jnp.maximum(g, 0.0)
        g = g @ w + b[0]
    return g


if __name__ == "__main__":
    # Small deterministic config consistent with the module's forward contract.
    B, N = 2, 16
    input_dim = 8
    h_dims = [32, 64]
    g_dims = [32, 16]
    num_classes = 4

    root = jax.random.PRNGKey(0)
    kx, kp = jax.random.split(root)

    x = jax.random.normal(kx, (B, N, input_dim), jnp.float32)
    h_params, g_params = build_params(kp, input_dim, h_dims, g_dims, num_classes)

    out = pointnet_forward(x, h_params, g_params)
    out = jax.block_until_ready(out)

    ref = pointnet_reference(x, h_params, g_params)
    assert out.shape == (B, num_classes)
    # bf16 MXU matmuls (f32 accumulation, f32 first layer) vs. a pure-f32 reference.
    assert jnp.allclose(out, ref, atol=5e-2, rtol=5e-2), (out, ref)

    print("KERNEL_OK")
</pallas_src>

<mosaic_0001>
module attributes {stable_mosaic.version = 11 : i64} {
  func.func @kernel(%arg0: i32, %arg1: i32, %arg2: memref<8x16x8xf32, #tpu.memory_space<vmem>>, %arg3: memref<8x128xf32, #tpu.memory_space<vmem>>, %arg4: memref<1x128xf32, #tpu.memory_space<vmem>>, %arg5: memref<128x128xbf16, #tpu.memory_space<vmem>>, %arg6: memref<1x128xf32, #tpu.memory_space<vmem>>, %arg7: memref<128x128xbf16, #tpu.memory_space<vmem>>, %arg8: memref<1x128xf32, #tpu.memory_space<vmem>>, %arg9: memref<128x128xbf16, #tpu.memory_space<vmem>>, %arg10: memref<1x128xf32, #tpu.memory_space<vmem>>, %arg11: memref<128x128xbf16, #tpu.memory_space<vmem>>, %arg12: memref<1x128xf32, #tpu.memory_space<vmem>>, %arg13: memref<8x128xf32, #tpu.memory_space<vmem>>, %arg14: memref<8x128xf32, #tpu.memory_space<vmem>>) attributes {dimension_semantics = [#tpu.dimension_semantics<parallel>, #tpu.dimension_semantics<arbitrary>], iteration_bounds = array<i64: 1, 1>, scalar_prefetch = 0 : i64, scratch_operands = 1 : i64, tpu.core_type = #tpu.core_type<tc>, window_params = [{transform_indices = @transform_0, window_bounds = array<i64: 8, 16, 8>}, {pipeline_mode = #tpu.pipeline_mode<synchronous>, transform_indices = @transform_1, window_bounds = array<i64: 8, 128>}, {pipeline_mode = #tpu.pipeline_mode<synchronous>, transform_indices = @transform_2, window_bounds = array<i64: 1, 128>}, {pipeline_mode = #tpu.pipeline_mode<synchronous>, transform_indices = @transform_3, window_bounds = array<i64: 128, 128>}, {pipeline_mode = #tpu.pipeline_mode<synchronous>, transform_indices = @transform_4, window_bounds = array<i64: 1, 128>}, {pipeline_mode = #tpu.pipeline_mode<synchronous>, transform_indices = @transform_5, window_bounds = array<i64: 128, 128>}, {pipeline_mode = #tpu.pipeline_mode<synchronous>, transform_indices = @transform_6, window_bounds = array<i64: 1, 128>}, {pipeline_mode = #tpu.pipeline_mode<synchronous>, transform_indices = @transform_7, window_bounds = array<i64: 128, 128>}, {pipeline_mode = #tpu.pipeline_mode<synchronous>, transform_indices = @transform_8, window_bounds = array<i64: 1, 128>}, {pipeline_mode = #tpu.pipeline_mode<synchronous>, transform_indices = @transform_9, window_bounds = array<i64: 128, 128>}, {pipeline_mode = #tpu.pipeline_mode<synchronous>, transform_indices = @transform_10, window_bounds = array<i64: 1, 128>}, {transform_indices = @transform_11, window_bounds = array<i64: 8, 128>}]} {
    %c0_i32 = arith.constant 0 : i32
    %0 = arith.cmpi eq, %arg1, %c0_i32 : i32
    %1 = arith.extui %0 : i1 to i32
    %c0_i32_0 = arith.constant 0 : i32
    %2 = arith.cmpi ne, %1, %c0_i32_0 : i32
    scf.if %2 {
      %cst_20 = arith.constant 0xFF800000 : f32
      %26 = vector.broadcast %cst_20 : f32 to vector<8x128xf32>
      %c0_21 = arith.constant 0 : index
      %c0_22 = arith.constant 0 : index
      %27 = vector.load %arg14[%c0_21, %c0_22] : memref<8x128xf32, #tpu.memory_space<vmem>>, vector<8x128xf32>
      tpu.vector_store %arg14[%c0_21, %c0_22], %26 {strides = array<i32>} : memref<8x128xf32, #tpu.memory_space<vmem>>, vector<8x128xf32>,
    } else {
    }
    %c0 = arith.constant 0 : index
    %c0_1 = arith.constant 0 : index
    %c0_2 = arith.constant 0 : index
    %3 = vector.load %arg2[%c0, %c0_1, %c0_2] : memref<8x16x8xf32, #tpu.memory_space<vmem>>, vector<8x16x8xf32>
    %4 = vector.shape_cast %3 : vector<8x16x8xf32> to vector<128x8xf32>
    %c0_3 = arith.constant 0 : index
    %c0_4 = arith.constant 0 : index
    %5 = vector.load %arg3[%c0_3, %c0_4] : memref<8x128xf32, #tpu.memory_space<vmem>>, vector<8x128xf32>
    %c0_5 = arith.constant 0 : index
    %c0_6 = arith.constant 0 : index
    %6 = vector.load %arg4[%c0_5, %c0_6] : memref<1x128xf32, #tpu.memory_space<vmem>>, vector<1x128xf32>
    %cst = arith.constant dense<0.000000e+00> : vector<128x128xf32>
    %7 = tpu.matmul %4, %5, %cst {dimension_numbers = #tpu.dot_dimension_numbers<[1], [0], [0], [1], [0, 0, 1, 1], [], []>} : vector<128x8xf32>, vector<8x128xf32>, vector<128x128xf32> -> vector<128x128xf32>
    %8 = vector.broadcast %6 : vector<1x128xf32> to vector<128x128xf32>
    %9 = arith.addf %7, %8 : vector<128x128xf32>
    %c0_7 = arith.constant 0 : index
    %c0_8 = arith.constant 0 : index
    %10 = vector.load %arg5[%c0_7, %c0_8] : memref<128x128xbf16, #tpu.memory_space<vmem>>, vector<128x128xbf16>
    %c0_9 = arith.constant 0 : index
    %c0_10 = arith.constant 0 : index
    %11 = vector.load %arg6[%c0_9, %c0_10] : memref<1x128xf32, #tpu.memory_space<vmem>>, vector<1x128xf32>
    %cst_11 = arith.constant 0.000000e+00 : f32
    %12 = vector.broadcast %cst_11 : f32 to vector<128x128xf32>
    %13 = arith.maximumf %9, %12 : vector<128x128xf32>
    %14 = arith.truncf %13 : vector<128x128xf32> to vector<128x128xbf16>
    %cst_12 = arith.constant dense<0.000000e+00> : vector<128x128xf32>
    %15 = tpu.matmul %14, %10, %cst_12 {dimension_numbers = #tpu.dot_dimension_numbers<[1], [0], [0], [1], [0, 0, 1, 1], [], []>} : vector<128x128xbf16>, vector<128x128xbf16>, vector<128x128xf32> -> vector<128x128xf32>
    %16 = vector.broadcast %11 : vector<1x128xf32> to vector<128x128xf32>
    %17 = arith.addf %15, %16 : vector<128x128xf32>
    %18 = vector.shape_cast %17 : vector<128x128xf32> to vector<8x16x128xf32>
    %c0_13 = arith.constant 0 : index
    %c0_14 = arith.constant 0 : index
    %19 = vector.load %arg14[%c0_13, %c0_14] : memref<8x128xf32, #tpu.memory_space<vmem>>, vector<8x128xf32>
    %cst_15 = arith.constant dense<0xFF800000> : vector<8x128xf32>
    %20 = vector.multi_reduction <maximumf>, %18, %cst_15 [1] : vector<8x16x128xf32> to vector<8x128xf32>
    %21 = arith.maximumf %19, %20 : vector<8x128xf32>
    %c0_16 = arith.constant 0 : index
    %c0_17 = arith.constant 0 : index
    %22 = vector.load %arg14[%c0_16, %c0_17] : memref<8x128xf32, #tpu.memory_space<vmem>>, vector<8x128xf32>
    tpu.vector_store %arg14[%c0_16, %c0_17], %21 {strides = array<i32>} : memref<8x128xf32, #tpu.memory_space<vmem>>, vector<8x128xf32>,
    %c0_i32_18 = arith.constant 0 : i32
    %23 = arith.cmpi eq, %arg1, %c0_i32_18 : i32
    %24 = arith.extui %23 : i1 to i32
    %c0_i32_19 = arith.constant 0 : i32
    %25 = arith.cmpi ne, %24, %c0_i32_19 : i32
    scf.if %25 {
      %c0_20 = arith.constant 0 : index
      %c0_21 = arith.constant 0 : index
      %26 = vector.load %arg14[%c0_20, %c0_21] : memref<8x128xf32, #tpu.memory_space<vmem>>, vector<8x128xf32>
      %c0_22 = arith.constant 0 : index
      %c0_23 = arith.constant 0 : index
      %27 = vector.load %arg7[%c0_22, %c0_23] : memref<128x128xbf16, #tpu.memory_space<vmem>>, vector<128x128xbf16>
      %c0_24 = arith.constant 0 : index
      %c0_25 = arith.constant 0 : index
      %28 = vector.load %arg8[%c0_24, %c0_25] : memref<1x128xf32, #tpu.memory_space<vmem>>, vector<1x128xf32>
      %29 = arith.truncf %26 : vector<8x128xf32> to vector<8x128xbf16>
      %cst_26 = arith.constant dense<0.000000e+00> : vector<8x128xf32>
      %30 = tpu.matmul %29, %27, %cst_26 {dimension_numbers = #tpu.dot_dimension_numbers<[1], [0], [0], [1], [0, 0, 1, 1], [], []>} : vector<8x128xbf16>, vector<128x128xbf16>, vector<8x128xf32> -> vector<8x128xf32>
      %31 = vector.broadcast %28 : vector<1x128xf32> to vector<8x128xf32>
      %32 = arith.addf %30, %31 : vector<8x128xf32>
      %cst_27 = arith.constant 0.000000e+00 : f32
      %33 = vector.broadcast %cst_27 : f32 to vector<8x128xf32>
      %34 = arith.maximumf %32, %33 : vector<8x128xf32>
      %c0_28 = arith.constant 0 : index
      %c0_29 = arith.constant 0 : index
      %35 = vector.load %arg9[%c0_28, %c0_29] : memref<128x128xbf16, #tpu.memory_space<vmem>>, vector<128x128xbf16>
      %c0_30 = arith.constant 0 : index
      %c0_31 = arith.constant 0 : index
      %36 = vector.load %arg10[%c0_30, %c0_31] : memref<1x128xf32, #tpu.memory_space<vmem>>, vector<1x128xf32>
      %37 = arith.truncf %34 : vector<8x128xf32> to vector<8x128xbf16>
      %cst_32 = arith.constant dense<0.000000e+00> : vector<8x128xf32>
      %38 = tpu.matmul %37, %35, %cst_32 {dimension_numbers = #tpu.dot_dimension_numbers<[1], [0], [0], [1], [0, 0, 1, 1], [], []>} : vector<8x128xbf16>, vector<128x128xbf16>, vector<8x128xf32> -> vector<8x128xf32>
      %39 = vector.broadcast %36 : vector<1x128xf32> to vector<8x128xf32>
      %40 = arith.addf %38, %39 : vector<8x128xf32>
      %cst_33 = arith.constant 0.000000e+00 : f32
      %41 = vector.broadcast %cst_33 : f32 to vector<8x128xf32>
      %42 = arith.maximumf %40, %41 : vector<8x128xf32>
      %c0_34 = arith.constant 0 : index
      %c0_35 = arith.constant 0 : index
      %43 = vector.load %arg11[%c0_34, %c0_35] : memref<128x128xbf16, #tpu.memory_space<vmem>>, vector<128x128xbf16>
      %c0_36 = arith.constant 0 : index
      %c0_37 = arith.constant 0 : index
      %44 = vector.load %arg12[%c0_36, %c0_37] : memref<1x128xf32, #tpu.memory_space<vmem>>, vector<1x128xf32>
      %45 = arith.truncf %42 : vector<8x128xf32> to vector<8x128xbf16>
      %cst_38 = arith.constant dense<0.000000e+00> : vector<8x128xf32>
      %46 = tpu.matmul %45, %43, %cst_38 {dimension_numbers = #tpu.dot_dimension_numbers<[1], [0], [0], [1], [0, 0, 1, 1], [], []>} : vector<8x128xbf16>, vector<128x128xbf16>, vector<8x128xf32> -> vector<8x128xf32>
      %47 = vector.broadcast %44 : vector<1x128xf32> to vector<8x128xf32>
      %48 = arith.addf %46, %47 : vector<8x128xf32>
      %c0_39 = arith.constant 0 : index
      %c0_40 = arith.constant 0 : index
      %49 = vector.load %arg13[%c0_39, %c0_40] : memref<8x128xf32, #tpu.memory_space<vmem>>, vector<8x128xf32>
      tpu.vector_store %arg13[%c0_39, %c0_40], %48 {strides = array<i32>} : memref<8x128xf32, #tpu.memory_space<vmem>>, vector<8x128xf32>,
    } else {
    }
    return
  }
  func.func @transform_0(%arg0: i32, %arg1: i32) -> (i32, i32, i32) {
    %c0_i32 = arith.constant 0 : i32
    %c0_i32_0 = arith.constant 0 : i32
    return %arg0, %arg1, %c0_i32 : i32, i32, i32
  }
  func.func @transform_1(%arg0: i32, %arg1: i32) -> (i32, i32) {
    %c0_i32 = arith.constant 0 : i32
    %c0_i32_0 = arith.constant 0 : i32
    %c0_i32_1 = arith.constant 0 : i32
    return %c0_i32, %c0_i32_0 : i32, i32
  }
  func.func @transform_2(%arg0: i32, %arg1: i32) -> (i32, i32) {
    %c0_i32 = arith.constant 0 : i32
    %c0_i32_0 = arith.constant 0 : i32
    %c0_i32_1 = arith.constant 0 : i32
    return %c0_i32, %c0_i32_0 : i32, i32
  }
  func.func @transform_3(%arg0: i32, %arg1: i32) -> (i32, i32) {
    %c0_i32 = arith.constant 0 : i32
    %c0_i32_0 = arith.constant 0 : i32
    %c0_i32_1 = arith.constant 0 : i32
    return %c0_i32, %c0_i32_0 : i32, i32
  }
  func.func @transform_4(%arg0: i32, %arg1: i32) -> (i32, i32) {
    %c0_i32 = arith.constant 0 : i32
    %c0_i32_0 = arith.constant 0 : i32
    %c0_i32_1 = arith.constant 0 : i32
    return %c0_i32, %c0_i32_0 : i32, i32
  }
  func.func @transform_5(%arg0: i32, %arg1: i32) -> (i32, i32) {
    %c0_i32 = arith.constant 0 : i32
    %c0_i32_0 = arith.constant 0 : i32
    %c0_i32_1 = arith.constant 0 : i32
    return %c0_i32, %c0_i32_0 : i32, i32
  }
  func.func @transform_6(%arg0: i32, %arg1: i32) -> (i32, i32) {
    %c0_i32 = arith.constant 0 : i32
    %c0_i32_0 = arith.constant 0 : i32
    %c0_i32_1 = arith.constant 0 : i32
    return %c0_i32, %c0_i32_0 : i32, i32
  }
  func.func @transform_7(%arg0: i32, %arg1: i32) -> (i32, i32) {
    %c0_i32 = arith.constant 0 : i32
    %c0_i32_0 = arith.constant 0 : i32
    %c0_i32_1 = arith.constant 0 : i32
    return %c0_i32, %c0_i32_0 : i32, i32
  }
  func.func @transform_8(%arg0: i32, %arg1: i32) -> (i32, i32) {
    %c0_i32 = arith.constant 0 : i32
    %c0_i32_0 = arith.constant 0 : i32
    %c0_i32_1 = arith.constant 0 : i32
    return %c0_i32, %c0_i32_0 : i32, i32
  }
  func.func @transform_9(%arg0: i32, %arg1: i32) -> (i32, i32) {
    %c0_i32 = arith.constant 0 : i32
    %c0_i32_0 = arith.constant 0 : i32
    %c0_i32_1 = arith.constant 0 : i32
    return %c0_i32, %c0_i32_0 : i32, i32
  }
  func.func @transform_10(%arg0: i32, %arg1: i32) -> (i32, i32) {
    %c0_i32 = arith.constant 0 : i32
    %c0_i32_0 = arith.constant 0 : i32
    %c0_i32_1 = arith.constant 0 : i32
    return %c0_i32, %c0_i32_0 : i32, i32
  }
  func.func @transform_11(%arg0: i32, %arg1: i32) -> (i32, i32) {
    %c0_i32 = arith.constant 0 : i32
    %c0_i32_0 = arith.constant 0 : i32
    return %arg0, %c0_i32 : i32, i32
  }
}

module attributes {stable_mosaic.version = 11 : i64} {
  func.func @kernel(%arg0: i32, %arg1: i32, %arg2: memref<8x16x8xf32, #tpu.memory_space<vmem>>, %arg3: memref<8x128xf32, #tpu.memory_space<vmem>>, %arg4: memref<1x128xf32, #tpu.memory_space<vmem>>, %arg5: memref<128x128xbf16, #tpu.memory_space<vmem>>, %arg6: memref<1x128xf32, #tpu.memory_space<vmem>>, %arg7: memref<128x128xbf16, #tpu.memory_space<vmem>>, %arg8: memref<1x128xf32, #tpu.memory_space<vmem>>, %arg9: memref<128x128xbf16, #tpu.memory_space<vmem>>, %arg10: memref<1x128xf32, #tpu.memory_space<vmem>>, %arg11: memref<128x128xbf16, #tpu.memory_space<vmem>>, %arg12: memref<1x128xf32, #tpu.memory_space<vmem>>, %arg13: memref<8x128xf32, #tpu.memory_space<vmem>>, %arg14: memref<8x128xf32, #tpu.memory_space<vmem>>) attributes {dimension_semantics = [#tpu.dimension_semantics<parallel>, #tpu.dimension_semantics<arbitrary>], iteration_bounds = array<i64: 1, 1>, scalar_prefetch = 0 : i64, scratch_operands = 1 : i64, tpu.core_type = #tpu.core_type<tc>, window_params = [{transform_indices = @transform_0, window_bounds = array<i64: 8, 16, 8>}, {pipeline_mode = #tpu.pipeline_mode<synchronous>, transform_indices = @transform_1, window_bounds = array<i64: 8, 128>}, {pipeline_mode = #tpu.pipeline_mode<synchronous>, transform_indices = @transform_2, window_bounds = array<i64: 1, 128>}, {pipeline_mode = #tpu.pipeline_mode<synchronous>, transform_indices = @transform_3, window_bounds = array<i64: 128, 128>}, {pipeline_mode = #tpu.pipeline_mode<synchronous>, transform_indices = @transform_4, window_bounds = array<i64: 1, 128>}, {pipeline_mode = #tpu.pipeline_mode<synchronous>, transform_indices = @transform_5, window_bounds = array<i64: 128, 128>}, {pipeline_mode = #tpu.pipeline_mode<synchronous>, transform_indices = @transform_6, window_bounds = array<i64: 1, 128>}, {pipeline_mode = #tpu.pipeline_mode<synchronous>, transform_indices = @transform_7, window_bounds = array<i64: 128, 128>}, {pipeline_mode = #tpu.pipeline_mode<synchronous>, transform_indices = @transform_8, window_bounds = array<i64: 1, 128>}, {pipeline_mode = #tpu.pipeline_mode<synchronous>, transform_indices = @transform_9, window_bounds = array<i64: 128, 128>}, {pipeline_mode = #tpu.pipeline_mode<synchronous>, transform_indices = @transform_10, window_bounds = array<i64: 1, 128>}, {transform_indices = @transform_11, window_bounds = array<i64: 8, 128>}]} {
    %c0_i32 = arith.constant 0 : i32
    %0 = arith.cmpi eq, %arg1, %c0_i32 : i32
    %1 = arith.extui %0 : i1 to i32
    %c0_i32_0 = arith.constant 0 : i32
    %2 = arith.cmpi ne, %1, %c0_i32_0 : i32
    scf.if %2 {
      %cst_20 = arith.constant 0xFF800000 : f32
      %26 = vector.broadcast %cst_20 : f32 to vector<8x128xf32>
      %c0_21 = arith.constant 0 : index
      %c0_22 = arith.constant 0 : index
      %27 = vector.load %arg14[%c0_21, %c0_22] : memref<8x128xf32, #tpu.memory_space<vmem>>, vector<8x128xf32>
      tpu.vector_store %arg14[%c0_21, %c0_22], %26 {strides = array<i32>} : memref<8x128xf32, #tpu.memory_space<vmem>>, vector<8x128xf32>,
    } else {
    }
    %c0 = arith.constant 0 : index
    %c0_1 = arith.constant 0 : index
    %c0_2 = arith.constant 0 : index
    %3 = vector.load %arg2[%c0, %c0_1, %c0_2] : memref<8x16x8xf32, #tpu.memory_space<vmem>>, vector<8x16x8xf32>
    %4 = vector.shape_cast %3 : vector<8x16x8xf32> to vector<128x8xf32>
    %c0_3 = arith.constant 0 : index
    %c0_4 = arith.constant 0 : index
    %5 = vector.load %arg3[%c0_3, %c0_4] : memref<8x128xf32, #tpu.memory_space<vmem>>, vector<8x128xf32>
    %c0_5 = arith.constant 0 : index
    %c0_6 = arith.constant 0 : index
    %6 = vector.load %arg4[%c0_5, %c0_6] : memref<1x128xf32, #tpu.memory_space<vmem>>, vector<1x128xf32>
    %cst = arith.constant dense<0.000000e+00> : vector<128x128xf32>
    %7 = tpu.matmul %4, %5, %cst {dimension_numbers = #tpu.dot_dimension_numbers<[1], [0], [0], [1], [0, 0, 1, 1], [], []>} : vector<128x8xf32>, vector<8x128xf32>, vector<128x128xf32> -> vector<128x128xf32>
    %8 = vector.broadcast %6 : vector<1x128xf32> to vector<128x128xf32>
    %9 = arith.addf %7, %8 : vector<128x128xf32>
    %c0_7 = arith.constant 0 : index
    %c0_8 = arith.constant 0 : index
    %10 = vector.load %arg5[%c0_7, %c0_8] : memref<128x128xbf16, #tpu.memory_space<vmem>>, vector<128x128xbf16>
    %c0_9 = arith.constant 0 : index
    %c0_10 = arith.constant 0 : index
    %11 = vector.load %arg6[%c0_9, %c0_10] : memref<1x128xf32, #tpu.memory_space<vmem>>, vector<1x128xf32>
    %cst_11 = arith.constant 0.000000e+00 : f32
    %12 = vector.broadcast %cst_11 : f32 to vector<128x128xf32>
    %13 = arith.maximumf %9, %12 : vector<128x128xf32>
    %14 = arith.truncf %13 : vector<128x128xf32> to vector<128x128xbf16>
    %cst_12 = arith.constant dense<0.000000e+00> : vector<128x128xf32>
    %15 = tpu.matmul %14, %10, %cst_12 {dimension_numbers = #tpu.dot_dimension_numbers<[1], [0], [0], [1], [0, 0, 1, 1], [], []>} : vector<128x128xbf16>, vector<128x128xbf16>, vector<128x128xf32> -> vector<128x128xf32>
    %16 = vector.broadcast %11 : vector<1x128xf32> to vector<128x128xf32>
    %17 = arith.addf %15, %16 : vector<128x128xf32>
    %18 = vector.shape_cast %17 : vector<128x128xf32> to vector<8x16x128xf32>
    %c0_13 = arith.constant 0 : index
    %c0_14 = arith.constant 0 : index
    %19 = vector.load %arg14[%c0_13, %c0_14] : memref<8x128xf32, #tpu.memory_space<vmem>>, vector<8x128xf32>
    %cst_15 = arith.constant dense<0xFF800000> : vector<8x128xf32>
    %20 = vector.multi_reduction <maximumf>, %18, %cst_15 [1] : vector<8x16x128xf32> to vector<8x128xf32>
    %21 = arith.maximumf %19, %20 : vector<8x128xf32>
    %c0_16 = arith.constant 0 : index
    %c0_17 = arith.constant 0 : index
    %22 = vector.load %arg14[%c0_16, %c0_17] : memref<8x128xf32, #tpu.memory_space<vmem>>, vector<8x128xf32>
    tpu.vector_store %arg14[%c0_16, %c0_17], %21 {strides = array<i32>} : memref<8x128xf32, #tpu.memory_space<vmem>>, vector<8x128xf32>,
    %c0_i32_18 = arith.constant 0 : i32
    %23 = arith.cmpi eq, %arg1, %c0_i32_18 : i32
    %24 = arith.extui %23 : i1 to i32
    %c0_i32_19 = arith.constant 0 : i32
    %25 = arith.cmpi ne, %24, %c0_i32_19 : i32
    scf.if %25 {
      %c0_20 = arith.constant 0 : index
      %c0_21 = arith.constant 0 : index
      %26 = vector.load %arg14[%c0_20, %c0_21] : memref<8x128xf32, #tpu.memory_space<vmem>>, vector<8x128xf32>
      %c0_22 = arith.constant 0 : index
      %c0_23 = arith.constant 0 : index
      %27 = vector.load %arg7[%c0_22, %c0_23] : memref<128x128xbf16, #tpu.memory_space<vmem>>, vector<128x128xbf16>
      %c0_24 = arith.constant 0 : index
      %c0_25 = arith.constant 0 : index
      %28 = vector.load %arg8[%c0_24, %c0_25] : memref<1x128xf32, #tpu.memory_space<vmem>>, vector<1x128xf32>
      %29 = arith.truncf %26 : vector<8x128xf32> to vector<8x128xbf16>
      %cst_26 = arith.constant dense<0.000000e+00> : vector<8x128xf32>
      %30 = tpu.matmul %29, %27, %cst_26 {dimension_numbers = #tpu.dot_dimension_numbers<[1], [0], [0], [1], [0, 0, 1, 1], [], []>} : vector<8x128xbf16>, vector<128x128xbf16>, vector<8x128xf32> -> vector<8x128xf32>
      %31 = vector.broadcast %28 : vector<1x128xf32> to vector<8x128xf32>
      %32 = arith.addf %30, %31 : vector<8x128xf32>
      %cst_27 = arith.constant 0.000000e+00 : f32
      %33 = vector.broadcast %cst_27 : f32 to vector<8x128xf32>
      %34 = arith.maximumf %32, %33 : vector<8x128xf32>
      %c0_28 = arith.constant 0 : index
      %c0_29 = arith.constant 0 : index
      %35 = vector.load %arg9[%c0_28, %c0_29] : memref<128x128xbf16, #tpu.memory_space<vmem>>, vector<128x128xbf16>
      %c0_30 = arith.constant 0 : index
      %c0_31 = arith.constant 0 : index
      %36 = vector.load %arg10[%c0_30, %c0_31] : memref<1x128xf32, #tpu.memory_space<vmem>>, vector<1x128xf32>
      %37 = arith.truncf %34 : vector<8x128xf32> to vector<8x128xbf16>
      %cst_32 = arith.constant dense<0.000000e+00> : vector<8x128xf32>
      %38 = tpu.matmul %37, %35, %cst_32 {dimension_numbers = #tpu.dot_dimension_numbers<[1], [0], [0], [1], [0, 0, 1, 1], [], []>} : vector<8x128xbf16>, vector<128x128xbf16>, vector<8x128xf32> -> vector<8x128xf32>
      %39 = vector.broadcast %36 : vector<1x128xf32> to vector<8x128xf32>
      %40 = arith.addf %38, %39 : vector<8x128xf32>
      %cst_33 = arith.constant 0.000000e+00 : f32
      %41 = vector.broadcast %cst_33 : f32 to vector<8x128xf32>
      %42 = arith.maximumf %40, %41 : vector<8x128xf32>
      %c0_34 = arith.constant 0 : index
      %c0_35 = arith.constant 0 : index
      %43 = vector.load %arg11[%c0_34, %c0_35] : memref<128x128xbf16, #tpu.memory_space<vmem>>, vector<128x128xbf16>
      %c0_36 = arith.constant 0 : index
      %c0_37 = arith.constant 0 : index
      %44 = vector.load %arg12[%c0_36, %c0_37] : memref<1x128xf32, #tpu.memory_space<vmem>>, vector<1x128xf32>
      %45 = arith.truncf %42 : vector<8x128xf32> to vector<8x128xbf16>
      %cst_38 = arith.constant dense<0.000000e+00> : vector<8x128xf32>
      %46 = tpu.matmul %45, %43, %cst_38 {dimension_numbers = #tpu.dot_dimension_numbers<[1], [0], [0], [1], [0, 0, 1, 1], [], []>} : vector<8x128xbf16>, vector<128x128xbf16>, vector<8x128xf32> -> vector<8x128xf32>
      %47 = vector.broadcast %44 : vector<1x128xf32> to vector<8x128xf32>
      %48 = arith.addf %46, %47 : vector<8x128xf32>
      %c0_39 = arith.constant 0 : index
      %c0_40 = arith.constant 0 : index
      %49 = vector.load %arg13[%c0_39, %c0_40] : memref<8x128xf32, #tpu.memory_space<vmem>>, vector<8x128xf32>
      tpu.vector_store %arg13[%c0_39, %c0_40], %48 {strides = array<i32>} : memref<8x128xf32, #tpu.memory_space<vmem>>, vector<8x128xf32>,
    } else {
    }
    return
  }
  func.func @transform_0(%arg0: i32, %arg1: i32) -> (i32, i32, i32) {
    %c0_i32 = arith.constant 0 : i32
    %c0_i32_0 = arith.constant 0 : i32
    return %arg0, %arg1, %c0_i32 : i32, i32, i32
  }
  func.func @transform_1(%arg0: i32, %arg1: i32) -> (i32, i32) {
    %c0_i32 = arith.constant 0 : i32
    %c0_i32_0 = arith.constant 0 : i32
    %c0_i32_1 = arith.constant 0 : i32
    return %c0_i32, %c0_i32_0 : i32, i32
  }
  func.func @transform_2(%arg0: i32, %arg1: i32) -> (i32, i32) {
    %c0_i32 = arith.constant 0 : i32
    %c0_i32_0 = arith.constant 0 : i32
    %c0_i32_1 = arith.constant 0 : i32
    return %c0_i32, %c0_i32_0 : i32, i32
  }
  func.func @transform_3(%arg0: i32, %arg1: i32) -> (i32, i32) {
    %c0_i32 = arith.constant 0 : i32
    %c0_i32_0 = arith.constant 0 : i32
    %c0_i32_1 = arith.constant 0 : i32
    return %c0_i32, %c0_i32_0 : i32, i32
  }
  func.func @transform_4(%arg0: i32, %arg1: i32) -> (i32, i32) {
    %c0_i32 = arith.constant 0 : i32
    %c0_i32_0 = arith.constant 0 : i32
    %c0_i32_1 = arith.constant 0 : i32
    return %c0_i32, %c0_i32_0 : i32, i32
  }
  func.func @transform_5(%arg0: i32, %arg1: i32) -> (i32, i32) {
    %c0_i32 = arith.constant 0 : i32
    %c0_i32_0 = arith.constant 0 : i32
    %c0_i32_1 = arith.constant 0 : i32
    return %c0_i32, %c0_i32_0 : i32, i32
  }
  func.func @transform_6(%arg0: i32, %arg1: i32) -> (i32, i32) {
    %c0_i32 = arith.constant 0 : i32
    %c0_i32_0 = arith.constant 0 : i32
    %c0_i32_1 = arith.constant 0 : i32
    return %c0_i32, %c0_i32_0 : i32, i32
  }
  func.func @transform_7(%arg0: i32, %arg1: i32) -> (i32, i32) {
    %c0_i32 = arith.constant 0 : i32
    %c0_i32_0 = arith.constant 0 : i32
    %c0_i32_1 = arith.constant 0 : i32
    return %c0_i32, %c0_i32_0 : i32, i32
  }
  func.func @transform_8(%arg0: i32, %arg1: i32) -> (i32, i32) {
    %c0_i32 = arith.constant 0 : i32
    %c0_i32_0 = arith.constant 0 : i32
    %c0_i32_1 = arith.constant 0 : i32
    return %c0_i32, %c0_i32_0 : i32, i32
  }
  func.func @transform_9(%arg0: i32, %arg1: i32) -> (i32, i32) {
    %c0_i32 = arith.constant 0 : i32
    %c0_i32_0 = arith.constant 0 : i32
    %c0_i32_1 = arith.constant 0 : i32
    return %c0_i32, %c0_i32_0 : i32, i32
  }
  func.func @transform_10(%arg0: i32, %arg1: i32) -> (i32, i32) {
    %c0_i32 = arith.constant 0 : i32
    %c0_i32_0 = arith.constant 0 : i32
    %c0_i32_1 = arith.constant 0 : i32
    return %c0_i32, %c0_i32_0 : i32, i32
  }
  func.func @transform_11(%arg0: i32, %arg1: i32) -> (i32, i32) {
    %c0_i32 = arith.constant 0 : i32
    %c0_i32_0 = arith.constant 0 : i32
    return %arg0, %c0_i32 : i32, i32
  }
}

</mosaic_0001>

<bundles_post_ra>
// kernel: tpu_custom_call.1
= control target key start
LH: loop header
LB: loop body
LE: loop exit
PB: predicated region body
PF: predicated region fallthrough
CT: control target
= control target key end

     0   :  { %16 = vsyncpa [#allocation4], 0  ;;  %s1515_s0 = inlined_call_operand.vmem [shape: f32[8,16,8], index: 0, kind: input, shape index: {}]   ;;  %s1516_s1 = inlined_call_operand.hbm [shape: f32[8,128], index: 1, kind: input, shape index: {}]   ;;  %s1517_s2 = inlined_call_operand.vmem [shape: f32[1,128], index: 2, kind: input, shape index: {}]   ;;  %s1518_s3 = inlined_call_operand.vmem [shape: bf16[128,128], index: 3, kind: input, shape index: {}]   ;;  %s1519_s4 = inlined_call_operand.vmem [shape: f32[1,128], index: 4, kind: input, shape index: {}]   ;;  %s1520_s5 = inlined_call_operand.vmem [shape: bf16[128,128], index: 5, kind: input, shape index: {}]   ;;  %s1521_s6 = inlined_call_operand.vmem [shape: f32[1,128], index: 6, kind: input, shape index: {}]   ;;  %s1522_s7 = inlined_call_operand.vmem [shape: bf16[128,128], index: 7, kind: input, shape index: {}]   ;;  %s1523_s8 = inlined_call_operand.vmem [shape: f32[1,128], index: 8, kind: input, shape index: {}]   ;;  %s1524_s9 = inlined_call_operand.hbm [shape: bf16[128,128], index: 9, kind: input, shape index: {}]   ;;  %s1525_s10 = inlined_call_operand.vmem [shape: f32[1,128], index: 10, kind: input, shape index: {}]   ;;  %s1526_s11 = inlined_call_operand.hbm [shape: f32[8,128], index: 11, kind: output, shape index: {}]  }
   0x1   :  { %17 = vsyncpa [#allocation7], 0 }
   0x2   :  { %18 = vsyncpa [#allocation5], 0  ;;  %s1258_s17 = smov [#allocation3]   ;;  %s1259_s19 = smov [#allocation6]  }
   0x3   :  { %s27_s18 = sshll.u32 %s1258_s17, 4  ;;  %s50_s20 = sshll.u32 %s1259_s19, 4  ;;  %s28_s18 = int_to_ptr.vmem [resolvable:$true] %s27_s18  ;;  %s51_s20 = int_to_ptr.vmem [resolvable:$true] %s50_s20 }
   0x4   :  { %s1200_s21 = scalar_lea.vmem %s28_s18, 128  ;;  %p1205_p1 = scmp.lt.s32.totalorder %s28_s18, %s28_s18 }
   0x5   :  { %p1201_p0 = scmp.ne.s32.totalorder %s28_s18, %s1200_s21  ;;  %p1206_p2 = scmp.lt.s32.totalorder %s1200_s21, %s1200_s21 }
   0x7   :  { %p1207_p3 = por %p1206_p2, %p1205_p1 }
   0x9   :  { %p1208_p4 = pnand %p1207_p3, %p1201_p0 }
   0xb   :  { %1211 = shalt.err (!%p1208_p4)
}
   0xc   :  { %30 = dma.hbm_to_vmem [thread:$0]  %s1516_s1, 128, %s28_s18, [#allocation4]  }
   0xd   :  { %s1220_s24 = scalar_lea.vmem %s51_s20, 1024  ;;  %p1225_p6 = scmp.lt.s32.totalorder %s51_s20, %s51_s20 }
   0xe   :  { %p1221_p5 = scmp.ne.s32.totalorder %s51_s20, %s1220_s24  ;;  %p1226_p7 = scmp.lt.s32.totalorder %s1220_s24, %s1220_s24 }
  0x10   :  { %p1227_p8 = por %p1226_p7, %p1225_p6 }
  0x12   :  { %p1228_p9 = pnand %p1227_p8, %p1221_p5 }
  0x14   :  { %1231 = shalt.err (!%p1228_p9)
}
  0x15   :  { %s1260_s25 = smov 64   ;;  %s1261_s26 = smov 4  }
  0x16   :  { %56 = dma.hbm_to_vmem [thread:$0]  %s1524_s9, 1024, %s51_s20, [#allocation7], %s1260_s25, %s1260_s25, %s1261_s26  }
  0x17   :  { %1252 = dma.done.wait [#allocation4], 128  }
  0x18   :  { %1253 = vsyncadd [#allocation4], 4294967168 }
  0x19   :  { %1254 = dma.done.wait [#allocation7], 1024  }
  0x1a   :  { %1255 = vsyncadd [#allocation7], 4294966272  ;;  %vm95_vm0 = vcmask 64512   ;;  %v87_v0 = vld [vmem:[#allocation3] sm:$0xff]  ;;  %v72_v2 = vld [vmem:[%s1515_s0 + $0x8] sm:$0xff]  ;;  %vm1263_vm1 = vmmov 0  }
  0x1b   :  { %v71_v1 = vld [vmem:[%s1515_s0] sm:$0xff]  ;;  %1035 = vmatprep.subr.mxu0 %v87_v0  ;;  %v73_v3 = vld [vmem:[%s1515_s0 + $0x10] sm:$0xff]  ;;  %v74_v4 = vld [vmem:[%s1515_s0 + $0x18] sm:$0xff]  ;;  %vm546_vm2 = vcmask 1041409   ;;  %vm548_vm3 = vcmask 1042434   ;;  %vm550_vm4 = vcmask 1043459  }
  0x1c   :  { %1037 = vmatprep.mubr.msk.f32.mxu0 %vm95_vm0, %v71_v1  ;;  %1036 = vmatpush3.msra.mxu0 %v87_v0  ;;  %v75_v5 = vld [vmem:[%s1515_s0 + $0x20] sm:$0xff]  ;;  %v1160_v6 = vld [vmem:[%s1518_s3 + $0x38] sm:$0xff]   ;;  %v1161_v7 = vld [vmem:[%s1518_s3 + $0x30] sm:$0xff]   ;;  %vm552_vm5 = vcmask 1044484   ;;  %vm554_vm6 = vcmask 1045509   ;;  %vm556_vm7 = vcmask 1046534  }
  0x1d   :  { %1038 = vmatmul.mubr.msk.f32.vlgmr.msra.gmra.mxu0 %vm95_vm0, %v72_v2  ;;  %v76_v8 = vld [vmem:[%s1515_s0 + $0x28] sm:$0xff]  ;;  %1061 = vmatprep.subr.bf16.mxu1 %v1160_v6  ;;  %v77_v9 = vld [vmem:[%s1515_s0 + $0x30] sm:$0xff]  ;;  %v78_v10 = vld [vmem:[%s1515_s0 + $0x38] sm:$0xff]  ;;  %vm558_vm8 = vcmask 1047559   ;;  %s1264_s25 = smov [#allocation8]  }
  0x1e   :  { %1040 = vmatprep.mubr.msk.f32.mxu0 %vm95_vm0, %v73_v3  ;;  %1062 = vmatpush3.bf16.msra.mxu1 %v1160_v6  ;;  %v1162_v11 = vld [vmem:[%s1518_s3 + $0x28] sm:$0xff]   ;;  %v79_v12 = vld [vmem:[%s1515_s0 + $0x40] sm:$0xff]  ;;  %v81_v15 = vld [vmem:[%s1515_s0 + $0x50] sm:$0xff]  ;;  %s912_s26 = sshll.u32 %s1264_s25, 4  ;;  %s913_s26 = int_to_ptr.vmem [resolvable:$true] %s912_s26 }
  0x1f   :  { %1063 = vmatprep.subr.bf16.mxu1 %v1161_v7  ;;  %v1163_v13 = vld [vmem:[%s1518_s3 + $0x20] sm:$0xff]   ;;  %v80_v14 = vld [vmem:[%s1515_s0 + $0x48] sm:$0xff]  ;;  %v1164_v16 = vld [vmem:[%s1518_s3 + $0x18] sm:$0xff]   ;;  %p1237_p11 = scmp.lt.s32.totalorder %s913_s26, %s913_s26 }
  0x20   :  { %v82_v17 = vld [vmem:[%s1515_s0 + $0x58] sm:$0xff]  ;;  %v83_v18 = vld [vmem:[%s1515_s0 + $0x60] sm:$0xff]  ;;  %v84_v19 = vld [vmem:[%s1515_s0 + $0x68] sm:$0xff] }
  0x21   :  { %1041 = vmatmul.mubr.msk.f32.gmra.mxu0 %vm95_vm0, %v74_v4  ;;  %v85_v20 = vld [vmem:[%s1515_s0 + $0x70] sm:$0xff]  ;;  %v86_v21 = vld [vmem:[%s1515_s0 + $0x78] sm:$0xff]  ;;  %v1166_v23 = vld [vmem:[%s1518_s3 + $0x8] sm:$0xff]  }
  0x22   :  { %1043 = vmatprep.mubr.msk.f32.mxu0 %vm95_vm0, %v75_v5  ;;  %1064 = vmatpush3.bf16.msra.mxu1 %v1161_v7  ;;  %v1165_v22 = vld [vmem:[%s1518_s3 + $0x10] sm:$0xff]   ;;  %v1167_v24 = vld [vmem:[%s1518_s3] sm:$0xff]  }
  0x23   :  { %1065 = vmatprep.subr.bf16.mxu1 %v1162_v11  ;;  %v922_v25 = vld [vmem:[%s1517_s2] ss:$0 sm:$0xff] }
  0x25   :  { %1044 = vmatmul.mubr.msk.f32.gmra.mxu0 %vm95_vm0, %v76_v8 }
  0x26   :  { %1046 = vmatprep.mubr.msk.f32.mxu0 %vm95_vm0, %v77_v9  ;;  %1066 = vmatpush3.bf16.msra.mxu1 %v1162_v11 }
  0x27   :  { %1067 = vmatprep.subr.bf16.mxu1 %v1163_v13 }
  0x29   :  { %1047 = vmatmul.mubr.msk.f32.gmra.mxu0 %vm95_vm0, %v78_v10 }
  0x2a   :  { %1049 = vmatprep.mubr.msk.f32.mxu0 %vm95_vm0, %v79_v12  ;;  %1068 = vmatpush3.bf16.msra.mxu1 %v1163_v13 }
  0x2b   :  { %1069 = vmatprep.subr.bf16.mxu1 %v1164_v16 }
  0x2d   :  { %1050 = vmatmul.mubr.msk.f32.gmra.mxu0 %vm95_vm0, %v80_v14 }
  0x2e   :  { %1052 = vmatprep.mubr.msk.f32.mxu0 %vm95_vm0, %v81_v15  ;;  %1070 = vmatpush3.bf16.msra.mxu1 %v1164_v16 }
  0x2f   :  { %1071 = vmatprep.subr.bf16.mxu1 %v1165_v22 }
  0x31   :  { %1053 = vmatmul.mubr.msk.f32.gmra.mxu0 %vm95_vm0, %v82_v17 }
  0x32   :  { %1055 = vmatprep.mubr.msk.f32.mxu0 %vm95_vm0, %v83_v18  ;;  %1072 = vmatpush3.bf16.msra.mxu1 %v1165_v22  ;;  %v1168_v18 = vld [vmem:[%s1520_s5 + $0x38] sm:$0xff]   ;;  %v1171_v22 = vld [vmem:[%s1520_s5 + $0x20] sm:$0xff]  }
  0x33   :  { %1073 = vmatprep.subr.bf16.mxu1 %v1166_v23 }
  0x35   :  { %1056 = vmatmul.mubr.msk.f32.gmra.mxu0 %vm95_vm0, %v84_v19  ;;  %v1262_v19 = vmov 0.0  }
  0x36   :  { %1058 = vmatprep.mubr.msk.f32.mxu0 %vm95_vm0, %v85_v20  ;;  %1074 = vmatpush3.bf16.msra.mxu1 %v1166_v23  ;;  %v1169_v20 = vld [vmem:[%s1520_s5 + $0x30] sm:$0xff]   ;;  %v1172_v23 = vld [vmem:[%s1520_s5 + $0x18] sm:$0xff]  }
  0x37   :  { %1075 = vmatprep.subr.bf16.mxu1 %v1167_v24  ;;  %1093 = vmatprep.subr.bf16.mxu0 %v1262_v19 }
  0x38   :  { %1094 = vmatpush3.bf16.msra.mxu0 %v1168_v18 }
  0x39   :  { %1059 = vmatmul.mubr.msk.f32.gmra.mxu0 %vm95_vm0, %v86_v21  ;;  %1095 = vmatprep.subr.bf16.mxu0 %v1262_v19  ;;  %v1170_v21 = vld [vmem:[%s1520_s5 + $0x28] sm:$0xff]  }
  0x3a   :  { %1076 = vmatpush3.bf16.msra.mxu1 %v1167_v24  ;;  %v1173_v24 = vld [vmem:[%s1520_s5 + $0x10] sm:$0xff]   ;;  %1109 = vmatprep.mubr.msk.bf16.mxu0 %vm1263_vm1, %v1262_v19 }
  0x3b   :  { %1113 = vmatprep.subr.bf16.mxu1 %v1262_v19 }
  0x3c   :  { %1096 = vmatpush3.bf16.msra.mxu0 %v1169_v20 }
  0x3d   :  { %1097 = vmatprep.subr.bf16.mxu0 %v1262_v19 }
  0x40   :  { %1098 = vmatpush3.bf16.msra.mxu0 %v1170_v21 }
  0x41   :  { %1099 = vmatprep.subr.bf16.mxu0 %v1262_v19 }
  0x44   :  { %1100 = vmatpush3.bf16.msra.mxu0 %v1171_v22 }
  0x45   :  { %1101 = vmatprep.subr.bf16.mxu0 %v1262_v19 }
  0x48   :  { %1102 = vmatpush3.bf16.msra.mxu0 %v1172_v23 }
  0x49   :  { %1103 = vmatprep.subr.bf16.mxu0 %v1262_v19 }
  0x4c   :  { %1104 = vmatpush3.bf16.msra.mxu0 %v1173_v24 }
  0x4d   :  { %1105 = vmatprep.subr.bf16.mxu0 %v1262_v19 }
  0xdd   :  { %v1039_v26 = vpop.f32.mrf.mxu0 }
  0xde   :  { %v216_v27 = vadd.f32 %v1039_v26, %v922_v25  ;;  %v1175_v26 = vld [vmem:[%s1520_s5] sm:$0xff]  }
  0xdf   :  { %v210_v28 = vpop.f32.mrf.mxu0 }
  0xe0   :  { %v211_v29 = vadd.f32 %v922_v25, %v210_v28  ;;  %v307_v31 = vmax.f32 %v216_v27, 0.0  ;;  %v1176_v27 = vld [vmem:[%s1522_s7 + $0x38] sm:$0xff]   ;;  %v1177_v28 = vld [vmem:[%s1522_s7 + $0x30] sm:$0xff]  }
  0xe1   :  { %v1042_v30 = vpop.f32.mrf.mxu0 }
  0xe2   :  { %v306_v32 = vmax.f32 %v211_v29, 0.0  ;;  %v226_v33 = vadd.f32 %v1042_v30, %v922_v25  ;;  %v1178_v29 = vld [vmem:[%s1522_s7 + $0x28] sm:$0xff]   ;;  %v1179_v30 = vld [vmem:[%s1522_s7 + $0x20] sm:$0xff]  }
  0xe3   :  { %v220_v34 = vpop.f32.mrf.mxu0 }
  0xe4   :  { %v221_v35 = vadd.f32 %v922_v25, %v220_v34  ;;  %v322_v36 = vpack.c.bf16 %v307_v31, %v306_v32  ;;  %v309_v38 = vmax.f32 %v226_v33, 0.0  ;;  %v1180_v31 = vld [vmem:[%s1522_s7 + $0x18] sm:$0xff]   ;;  %v1181_v32 = vld [vmem:[%s1522_s7 + $0x10] sm:$0xff]   ;;  %v1182_v33 = vld [vmem:[%s1522_s7 + $0x8] sm:$0xff]  }
  0xe5   :  { %v1045_v37 = vpop.f32.mrf.mxu0 }
  0xe6   :  { %v308_v39 = vmax.f32 %v221_v35, 0.0  ;;  %v236_v40 = vadd.f32 %v1045_v37, %v922_v25  ;;  %1077 = vmatprep.mubr.bf16.mxu1 %v322_v36  ;;  %v939_v37 = vld [vmem:[%s1519_s4] ss:$0 sm:$0xff] }
  0xe7   :  { %v230_v41 = vpop.f32.mrf.mxu0 }
  0xe8   :  { %v323_v42 = vpack.c.bf16 %v309_v38, %v308_v39  ;;  %v231_v43 = vadd.f32 %v922_v25, %v230_v41  ;;  %v311_v45 = vmax.f32 %v236_v40, 0.0 }
  0xe9   :  { %v1048_v44 = vpop.f32.mrf.mxu0 }
  0xea   :  { %v310_v46 = vmax.f32 %v231_v43, 0.0  ;;  %v246_v47 = vadd.f32 %v1048_v44, %v922_v25  ;;  %1078 = vmatmul.mubr.bf16.vlgmr.msra.gmra.mxu1 %v323_v42 }
  0xeb   :  { %v240_v48 = vpop.f32.mrf.mxu0  ;;  %1114 = vmatpush3.bf16.msra.mxu1 %v1176_v27 }
  0xec   :  { %v324_v49 = vpack.c.bf16 %v311_v45, %v310_v46  ;;  %v241_v50 = vadd.f32 %v922_v25, %v240_v48  ;;  %v313_v52 = vmax.f32 %v246_v47, 0.0  ;;  %1115 = vmatprep.subr.bf16.mxu1 %v1262_v19 }
  0xed   :  { %v1051_v51 = vpop.f32.mrf.mxu0 }
  0xee   :  { %v312_v53 = vmax.f32 %v241_v50, 0.0  ;;  %v256_v54 = vadd.f32 %v1051_v51, %v922_v25  ;;  %1081 = vmatprep.mubr.bf16.mxu1 %v324_v49 }
  0xef   :  { %v250_v55 = vpop.f32.mrf.mxu0  ;;  %1116 = vmatpush3.bf16.msra.mxu1 %v1177_v28 }
  0xf0   :  { %v325_v56 = vpack.c.bf16 %v313_v52, %v312_v53  ;;  %v251_v57 = vadd.f32 %v922_v25, %v250_v55  ;;  %v315_v59 = vmax.f32 %v256_v54, 0.0  ;;  %1117 = vmatprep.subr.bf16.mxu1 %v1262_v19 }
  0xf1   :  { %v1054_v58 = vpop.f32.mrf.mxu0 }
  0xf2   :  { %v314_v60 = vmax.f32 %v251_v57, 0.0  ;;  %v266_v61 = vadd.f32 %v1054_v58, %v922_v25  ;;  %1082 = vmatmul.mubr.bf16.gmra.mxu1 %v325_v56 }
  0xf3   :  { %v260_v62 = vpop.f32.mrf.mxu0  ;;  %1118 = vmatpush3.bf16.msra.mxu1 %v1178_v29 }
  0xf4   :  { %v326_v63 = vpack.c.bf16 %v315_v59, %v314_v60  ;;  %v261_v0 = vadd.f32 %v922_v25, %v260_v62  ;;  %v317_v2 = vmax.f32 %v266_v61, 0.0  ;;  %1119 = vmatprep.subr.bf16.mxu1 %v1262_v19 }
  0xf5   :  { %v1057_v1 = vpop.f32.mrf.mxu0 }
  0xf6   :  { %v316_v3 = vmax.f32 %v261_v0, 0.0  ;;  %v276_v4 = vadd.f32 %v1057_v1, %v922_v25  ;;  %1085 = vmatprep.mubr.bf16.mxu1 %v326_v63 }
  0xf7   :  { %v270_v5 = vpop.f32.mrf.mxu0  ;;  %1120 = vmatpush3.bf16.msra.mxu1 %v1179_v30 }
  0xf8   :  { %v327_v6 = vpack.c.bf16 %v317_v2, %v316_v3  ;;  %v271_v7 = vadd.f32 %v922_v25, %v270_v5  ;;  %v319_v9 = vmax.f32 %v276_v4, 0.0  ;;  %1121 = vmatprep.subr.bf16.mxu1 %v1262_v19 }
  0xf9   :  { %v1060_v8 = vpop.f32.mrf.mxu0 }
  0xfa   :  { %v318_v10 = vmax.f32 %v271_v7, 0.0  ;;  %v286_v11 = vadd.f32 %v1060_v8, %v922_v25  ;;  %1086 = vmatmul.mubr.bf16.gmra.mxu1 %v327_v6 }
  0xfb   :  { %v280_v12 = vpop.f32.mrf.mxu0  ;;  %1122 = vmatpush3.bf16.msra.mxu1 %v1180_v31 }
  0xfc   :  { %v328_v13 = vpack.c.bf16 %v319_v9, %v318_v10  ;;  %v281_v14 = vadd.f32 %v922_v25, %v280_v12  ;;  %v321_v15 = vmax.f32 %v286_v11, 0.0  ;;  %v1174_v25 = vld [vmem:[%s1520_s5 + $0x8] sm:$0xff]   ;;  %1123 = vmatprep.subr.bf16.mxu1 %v1262_v19 }
  0xfd   :  { %1106 = vmatpush3.bf16.msra.mxu0 %v1174_v25 }
  0xfe   :  { %v320_v16 = vmax.f32 %v281_v14, 0.0  ;;  %1089 = vmatprep.mubr.bf16.mxu1 %v328_v13  ;;  %1107 = vmatprep.subr.bf16.mxu0 %v1262_v19 }
  0xff   :  { %1124 = vmatpush3.bf16.msra.mxu1 %v1181_v32 }
 0x100   :  { %v329_v17 = vpack.c.bf16 %v321_v15, %v320_v16  ;;  %1125 = vmatprep.subr.bf16.mxu1 %v1262_v19 }
 0x101   :  { %1108 = vmatpush3.bf16.msra.mxu0 %v1175_v26 }
 0x102   :  { %1090 = vmatmul.mubr.bf16.gmra.mxu1 %v329_v17  ;;  %1133 = vmatprep.subr.bf16.mxu0 %v1262_v19 }
 0x103   :  { %1129 = vmatprep.mubr.msk.bf16.mxu1 %vm1263_vm1, %v1262_v19  ;;  %1126 = vmatpush3.bf16.msra.mxu1 %v1182_v33 }
 0x104   :  { %1127 = vmatprep.subr.bf16.mxu1 %v1262_v19 }
 0x1aa   :  { %v1079_v34 = vpop.f32.mrf.mxu1 }
 0x1ab   :  { %v427_v43 = vadd.f32 %v1079_v34, %v939_v37 }
 0x1ac   :  { %v418_v35 = vpop.f32.mrf.mxu1 }
 0x1ad   :  { %v419_v40 = vadd.f32 %v939_v37, %v418_v35 }
 0x1ae   :  { %v1080_v36 = vpop.f32.mrf.mxu1 }
 0x1af   :  { %v430_v41 = vadd.f32 %v1080_v36, %v939_v37 }
 0x1b0   :  { %v421_v38 = vpop.f32.mrf.mxu1 }
 0x1b1   :  { %v422_v39 = vadd.f32 %v939_v37, %v421_v38  ;;  %v489_v46 = vmax.f32 %v427_v43, %v430_v41 }
 0x1b2   :  { %v1083_v42 = vpop.f32.mrf.mxu1 }
 0x1b3   :  { %v482_v44 = vmax.f32 %v419_v40, %v422_v39  ;;  %v443_v50 = vadd.f32 %v1083_v42, %v939_v37  ;;  %v490_v54 = vrot.slane %v489_v46, 4 }
 0x1b4   :  { %v434_v45 = vpop.f32.mrf.mxu1 }
 0x1b5   :  { %v483_v49 = vrot.slane %v482_v44, 4  ;;  %v435_v52 = vadd.f32 %v939_v37, %v434_v45  ;;  %v491_v61 = vmax.f32 %v489_v46, %v490_v54 }
 0x1b6   :  { %v1084_v47 = vpop.f32.mrf.mxu1 }
 0x1b7   :  { %v446_v48 = vadd.f32 %v1084_v47, %v939_v37  ;;  %v484_v58 = vmax.f32 %v482_v44, %v483_v49  ;;  %v492_v7 = vrot.slane %v491_v61, 2 }
 0x1b8   :  { %v437_v51 = vpop.f32.mrf.mxu1 }
 0x1b9   :  { %v438_v53 = vadd.f32 %v939_v37, %v437_v51  ;;  %v503_v55 = vmax.f32 %v443_v50, %v446_v48  ;;  %v485_v3 = vrot.slane %v484_v58, 2  ;;  %v493_v17 = vmax.f32 %v491_v61, %v492_v7  ;;  %v1186_v7 = vld [vmem:[#allocation6 + $0x28] sm:$0xff]  }
 0x1ba   :  { %v1087_v56 = vpop.f32.mrf.mxu1 }
 0x1bb   :  { %v496_v57 = vmax.f32 %v435_v52, %v438_v53  ;;  %v504_v62 = vrot.slane %v503_v55, 4  ;;  %v459_v1 = vadd.f32 %v1087_v56, %v939_v37  ;;  %v486_v13 = vmax.f32 %v484_v58, %v485_v3 }
 0x1bc   :  { %v450_v59 = vpop.f32.mrf.mxu1  ;;  %v494_v32 = vrot.slane %v493_v17, 1 }
 0x1bd   :  { %v497_v60 = vrot.slane %v496_v57, 4  ;;  %v505_v8 = vmax.f32 %v503_v55, %v504_v62  ;;  %v451_v9 = vadd.f32 %v939_v37, %v450_v59  ;;  %v487_v25 = vrot.slane %v486_v13, 1 }
 0x1be   :  { %v1088_v63 = vpop.f32.mrf.mxu1  ;;  %v495_v44 = vmax.f32 %v493_v17, %v494_v32 }
 0x1bf   :  { %v498_v0 = vmax.f32 %v496_v57, %v497_v60  ;;  %v462_v2 = vadd.f32 %v1088_v63, %v939_v37  ;;  %v506_v18 = vrot.slane %v505_v8, 2  ;;  %v488_v39 = vmax.f32 %v486_v13, %v487_v25 }
 0x1c0   :  { %v453_v4 = vpop.f32.mrf.mxu1 }
 0x1c1   :  { %v499_v5 = vrot.slane %v498_v0, 2  ;;  %v517_v6 = vmax.f32 %v459_v1, %v462_v2  ;;  %v454_v10 = vadd.f32 %v939_v37, %v453_v4  ;;  %v507_v33 = vmax.f32 %v505_v8, %v506_v18  ;;  %v1183_v4 = vld [vmem:[%s1522_s7] sm:$0xff]   ;;  %v1187_v8 = vld [vmem:[#allocation6 + $0x20] sm:$0xff]  }
 0x1c2   :  { %v1091_v11 = vpop.f32.mrf.mxu1  ;;  %1128 = vmatpush3.bf16.msra.mxu1 %v1183_v4 }
 0x1c3   :  { %v518_v12 = vrot.slane %v517_v6, 4  ;;  %v510_v14 = vmax.f32 %v451_v9, %v454_v10  ;;  %v500_v16 = vmax.f32 %v498_v0, %v499_v5  ;;  %v475_v23 = vadd.f32 %v1091_v11, %v939_v37  ;;  %v1184_v5 = vld [vmem:[#allocation6 + $0x38] sm:$0xff]   ;;  %v1189_v10 = vld [vmem:[#allocation6 + $0x10] sm:$0xff]  }
 0x1c4   :  { %v466_v15 = vpop.f32.mrf.mxu1  ;;  %v508_v45 = vrot.slane %v507_v33, 1  ;;  %v1188_v9 = vld [vmem:[#allocation6 + $0x18] sm:$0xff]  }
 0x1c5   :  { %v519_v20 = vmax.f32 %v517_v6, %v518_v12  ;;  %v511_v21 = vrot.slane %v510_v14, 4  ;;  %v501_v28 = vrot.slane %v500_v16, 1  ;;  %v467_v29 = vadd.f32 %v939_v37, %v466_v15  ;;  %v1185_v6 = vld [vmem:[#allocation6 + $0x30] sm:$0xff]   ;;  %v948_v11 = vld [vmem:[%s1521_s6] ss:$0 sm:$0xff] }
 0x1c6   :  { %v1092_v22 = vpop.f32.mrf.mxu1  ;;  %v509_v54 = vmax.f32 %v507_v33, %v508_v45 }
 0x1c7   :  { %v478_v24 = vadd.f32 %v1092_v22, %v939_v37  ;;  %v512_v26 = vmax.f32 %v510_v14, %v511_v21  ;;  %v520_v34 = vrot.slane %v519_v20, 2  ;;  %v502_v41 = vmax.f32 %v500_v16, %v501_v28  ;;  %v1191_v21 = vld [vmem:[#allocation6] sm:$0xff]   ;;  %v957_v22 = vld [vmem:[%s1523_s8] ss:$0 sm:$0xff]  ;;  %s1232_s8 = scalar_lea.vmem %s913_s26, 128 }
 0x1c8   :  { %v469_v27 = vpop.f32.mrf.mxu1  ;;  %p1233_p10 = scmp.ne.s32.totalorder %s913_s26, %s1232_s8  ;;  %p1238_p12 = scmp.lt.s32.totalorder %s1232_s8, %s1232_s8 }
 0x1c9   :  { %v531_v30 = vmax.f32 %v475_v23, %v478_v24  ;;  %v470_v31 = vadd.f32 %v939_v37, %v469_v27  ;;  %v513_v35 = vrot.slane %v512_v26, 2  ;;  %v521_v46 = vmax.f32 %v519_v20, %v520_v34  ;;  %v1190_v20 = vld [vmem:[#allocation6 + $0x8] sm:$0xff]  }
 0x1ca   :  { %v547_v37 = vsel %vm546_vm2, %v495_v44, %v488_v39  ;;  %p1239_p13 = por %p1238_p12, %p1237_p11 }
 0x1cb   :  { %v532_v36 = vrot.slane %v531_v30, 4  ;;  %v524_v38 = vmax.f32 %v467_v29, %v470_v31  ;;  %v514_v40 = vmax.f32 %v512_v26, %v513_v35  ;;  %v549_v50 = vsel %vm548_vm3, %v502_v41, %v547_v37 }
 0x1cc   :  { %v522_v55 = vrot.slane %v521_v46, 1  ;;  %v551_v57 = vsel %vm550_vm4, %v509_v54, %v549_v50  ;;  %p1240_p0 = pnand %p1239_p13, %p1233_p10 }
 0x1cd   :  { %v533_v42 = vmax.f32 %v531_v30, %v532_v36  ;;  %v525_v43 = vrot.slane %v524_v38, 4  ;;  %v515_v47 = vrot.slane %v514_v40, 1  ;;  %v966_v30 = vld [vmem:[%s1525_s10] ss:$0 sm:$0xff] }
 0x1ce   :  { %v523_v61 = vmax.f32 %v521_v46, %v522_v55 }
 0x1cf   :  { %v534_v48 = vrot.slane %v533_v42, 2  ;;  %v526_v49 = vmax.f32 %v524_v38, %v525_v43  ;;  %v516_v51 = vmax.f32 %v514_v40, %v515_v47 }
 0x1d1   :  { %v535_v52 = vmax.f32 %v533_v42, %v534_v48  ;;  %v527_v53 = vrot.slane %v526_v49, 2  ;;  %v553_v59 = vsel %vm552_vm5, %v516_v51, %v551_v57 }
 0x1d2   :  { %v555_v0 = vsel %vm554_vm6, %v523_v61, %v553_v59 }
 0x1d3   :  { %v528_v56 = vmax.f32 %v526_v49, %v527_v53  ;;  %v536_v58 = vrot.slane %v535_v52, 1 }
 0x1d5   :  { %v529_v60 = vrot.slane %v528_v56, 1  ;;  %v537_v63 = vmax.f32 %v535_v52, %v536_v58 }
 0x1d7   :  { %v530_v62 = vmax.f32 %v528_v56, %v529_v60 }
 0x1d9   :  { %v557_v1 = vsel %vm556_vm7, %v530_v62, %v555_v0 }
 0x1da   :  { %v559_v2 = vsel %vm558_vm8, %v537_v63, %v557_v1 }
 0x1db   :  { %v584_v3 = vpack.c.bf16 %v559_v2, %v559_v2 }
 0x1dd   :  { %1110 = vmatmul.mubr.bf16.vlgmr.msra.gmra.mxu0 %v584_v3 }
 0x1de   :  { %1149 = vmatprep.mubr.msk.bf16.mxu0 %vm1263_vm1, %v1262_v19  ;;  %1134 = vmatpush3.bf16.msra.mxu0 %v1184_v5 }
 0x1df   :  { %1135 = vmatprep.subr.bf16.mxu0 %v1262_v19 }
 0x1e2   :  { %1136 = vmatpush3.bf16.msra.mxu0 %v1185_v6 }
 0x1e3   :  { %1137 = vmatprep.subr.bf16.mxu0 %v1262_v19 }
 0x1e6   :  { %1138 = vmatpush3.bf16.msra.mxu0 %v1186_v7 }
 0x1e7   :  { %1139 = vmatprep.subr.bf16.mxu0 %v1262_v19 }
 0x1ea   :  { %1140 = vmatpush3.bf16.msra.mxu0 %v1187_v8 }
 0x1eb   :  { %1141 = vmatprep.subr.bf16.mxu0 %v1262_v19 }
 0x1ee   :  { %1142 = vmatpush3.bf16.msra.mxu0 %v1188_v9 }
 0x1ef   :  { %1143 = vmatprep.subr.bf16.mxu0 %v1262_v19 }
 0x1f2   :  { %1144 = vmatpush3.bf16.msra.mxu0 %v1189_v10 }
 0x1f3   :  { %1145 = vmatprep.subr.bf16.mxu0 %v1262_v19 }
 0x1f6   :  { %1146 = vmatpush3.bf16.msra.mxu0 %v1190_v20 }
 0x1f7   :  { %1147 = vmatprep.subr.bf16.mxu0 %v1262_v19 }
 0x1fa   :  { %1148 = vmatpush3.bf16.msra.mxu0 %v1191_v21 }
 0x29d   :  { %v673_v12 = vpop.f32.mrf.mxu0 }
 0x29e   :  { %v674_v13 = vadd.f32 %v948_v11, %v673_v12 }
 0x29f   :  { %v1111_v14 = vpop.f32.mrf.mxu0 }
 0x2a0   :  { %v679_v15 = vmax.f32 %v674_v13, 0.0 }
 0x2a1   :  { %v676_v16 = vpop.f32.mrf.mxu0 }
 0x2a2   :  { %v697_v17 = vpack.c.bf16 %v679_v15, %v679_v15 }
 0x2a3   :  { %v1112_v18 = vpop.f32.mrf.mxu0 }
 0x2a4   :  { %1130 = vmatmul.mubr.bf16.vlgmr.msra.gmra.mxu1 %v697_v17 }
 0x364   :  { %v786_v23 = vpop.f32.mrf.mxu1 }
 0x365   :  { %v787_v24 = vadd.f32 %v957_v22, %v786_v23 }
 0x366   :  { %v1131_v25 = vpop.f32.mrf.mxu1 }
 0x367   :  { %v792_v26 = vmax.f32 %v787_v24, 0.0 }
 0x368   :  { %v789_v27 = vpop.f32.mrf.mxu1 }
 0x369   :  { %v810_v28 = vpack.c.bf16 %v792_v26, %v792_v26 }
 0x36a   :  { %v1132_v29 = vpop.f32.mrf.mxu1 }
 0x36b   :  { %1150 = vmatmul.mubr.bf16.vlgmr.msra.gmra.mxu0 %v810_v28 }
 0x42b   :  { %v899_v19 = vpop.f32.mrf.mxu0 }
 0x42c   :  { %v900_v31 = vadd.f32 %v966_v30, %v899_v19 }
 0x42d   :  { %v1151_v32 = vpop.f32.mrf.mxu0 }
 0x42e   :  { %905 = vst [vmem:[#allocation8] sm:$0xff] %v900_v31 }
 0x42f   :  { %v902_v33 = vpop.f32.mrf.mxu0 }
 0x430   :  { %1243 = shalt.err (!%p1240_p0)
}
 0x431   :  { %915 = dma.vmem_to_hbm [thread:$0]  %s913_s26, 128, %s1526_s11, [#allocation5]   ;;  %v1152_v34 = vpop.f32.mrf.mxu0 }
 0x432   :  { %1256 = dma.done.wait [#allocation5], 128  }
 0x433   :  { %1257 = vsyncadd [#allocation5], 4294967168 }
 0x434   :  { %919 = vsyncpa [#allocation4], 1 }
 0x435   :  { %920 = vsyncpa [#allocation7], 1 }
 0x436   :  { %921 = vsyncpa [#allocation5], 1 }

// kernel: tpu_custom_call.1
= control target key start
LH: loop header
LB: loop body
LE: loop exit
PB: predicated region body
PF: predicated region fallthrough
CT: control target
= control target key end

     0   :  { %16 = vsyncpa [#allocation4], 0  ;;  %s1515_s0 = inlined_call_operand.vmem [shape: f32[8,16,8], index: 0, kind: input, shape index: {}]   ;;  %s1516_s1 = inlined_call_operand.hbm [shape: f32[8,128], index: 1, kind: input, shape index: {}]   ;;  %s1517_s2 = inlined_call_operand.vmem [shape: f32[1,128], index: 2, kind: input, shape index: {}]   ;;  %s1518_s3 = inlined_call_operand.vmem [shape: bf16[128,128], index: 3, kind: input, shape index: {}]   ;;  %s1519_s4 = inlined_call_operand.vmem [shape: f32[1,128], index: 4, kind: input, shape index: {}]   ;;  %s1520_s5 = inlined_call_operand.vmem [shape: bf16[128,128], index: 5, kind: input, shape index: {}]   ;;  %s1521_s6 = inlined_call_operand.vmem [shape: f32[1,128], index: 6, kind: input, shape index: {}]   ;;  %s1522_s7 = inlined_call_operand.vmem [shape: bf16[128,128], index: 7, kind: input, shape index: {}]   ;;  %s1523_s8 = inlined_call_operand.vmem [shape: f32[1,128], index: 8, kind: input, shape index: {}]   ;;  %s1524_s9 = inlined_call_operand.hbm [shape: bf16[128,128], index: 9, kind: input, shape index: {}]   ;;  %s1525_s10 = inlined_call_operand.vmem [shape: f32[1,128], index: 10, kind: input, shape index: {}]   ;;  %s1526_s11 = inlined_call_operand.hbm [shape: f32[8,128], index: 11, kind: output, shape index: {}]  }
   0x1   :  { %17 = vsyncpa [#allocation7], 0 }
   0x2   :  { %18 = vsyncpa [#allocation5], 0  ;;  %s1258_s17 = smov [#allocation3]   ;;  %s1259_s19 = smov [#allocation6]  }
   0x3   :  { %s27_s18 = sshll.u32 %s1258_s17, 4  ;;  %s50_s20 = sshll.u32 %s1259_s19, 4  ;;  %s28_s18 = int_to_ptr.vmem [resolvable:$true] %s27_s18  ;;  %s51_s20 = int_to_ptr.vmem [resolvable:$true] %s50_s20 }
   0x4   :  { %s1200_s21 = scalar_lea.vmem %s28_s18, 128  ;;  %p1205_p1 = scmp.lt.s32.totalorder %s28_s18, %s28_s18 }
   0x5   :  { %p1201_p0 = scmp.ne.s32.totalorder %s28_s18, %s1200_s21  ;;  %p1206_p2 = scmp.lt.s32.totalorder %s1200_s21, %s1200_s21 }
   0x7   :  { %p1207_p3 = por %p1206_p2, %p1205_p1 }
   0x9   :  { %p1208_p4 = pnand %p1207_p3, %p1201_p0 }
   0xb   :  { %1211 = shalt.err (!%p1208_p4)
}
   0xc   :  { %30 = dma.hbm_to_vmem [thread:$0]  %s1516_s1, 128, %s28_s18, [#allocation4]  }
   0xd   :  { %s1220_s24 = scalar_lea.vmem %s51_s20, 1024  ;;  %p1225_p6 = scmp.lt.s32.totalorder %s51_s20, %s51_s20 }
   0xe   :  { %p1221_p5 = scmp.ne.s32.totalorder %s51_s20, %s1220_s24  ;;  %p1226_p7 = scmp.lt.s32.totalorder %s1220_s24, %s1220_s24 }
  0x10   :  { %p1227_p8 = por %p1226_p7, %p1225_p6 }
  0x12   :  { %p1228_p9 = pnand %p1227_p8, %p1221_p5 }
  0x14   :  { %1231 = shalt.err (!%p1228_p9)
}
  0x15   :  { %s1260_s25 = smov 64   ;;  %s1261_s26 = smov 4  }
  0x16   :  { %56 = dma.hbm_to_vmem [thread:$0]  %s1524_s9, 1024, %s51_s20, [#allocation7], %s1260_s25, %s1260_s25, %s1261_s26  }
  0x17   :  { %1252 = dma.done.wait [#allocation4], 128  }
  0x18   :  { %1253 = vsyncadd [#allocation4], 4294967168 }
  0x19   :  { %1254 = dma.done.wait [#allocation7], 1024  }
  0x1a   :  { %1255 = vsyncadd [#allocation7], 4294966272  ;;  %vm95_vm0 = vcmask 64512   ;;  %v87_v0 = vld [vmem:[#allocation3] sm:$0xff]  ;;  %v72_v2 = vld [vmem:[%s1515_s0 + $0x8] sm:$0xff]  ;;  %vm1263_vm1 = vmmov 0  }
  0x1b   :  { %v71_v1 = vld [vmem:[%s1515_s0] sm:$0xff]  ;;  %1035 = vmatprep.subr.mxu0 %v87_v0  ;;  %v73_v3 = vld [vmem:[%s1515_s0 + $0x10] sm:$0xff]  ;;  %v74_v4 = vld [vmem:[%s1515_s0 + $0x18] sm:$0xff]  ;;  %vm546_vm2 = vcmask 1041409   ;;  %vm548_vm3 = vcmask 1042434   ;;  %vm550_vm4 = vcmask 1043459  }
  0x1c   :  { %1037 = vmatprep.mubr.msk.f32.mxu0 %vm95_vm0, %v71_v1  ;;  %1036 = vmatpush3.msra.mxu0 %v87_v0  ;;  %v75_v5 = vld [vmem:[%s1515_s0 + $0x20] sm:$0xff]  ;;  %v1160_v6 = vld [vmem:[%s1518_s3 + $0x38] sm:$0xff]   ;;  %v1161_v7 = vld [vmem:[%s1518_s3 + $0x30] sm:$0xff]   ;;  %vm552_vm5 = vcmask 1044484   ;;  %vm554_vm6 = vcmask 1045509   ;;  %vm556_vm7 = vcmask 1046534  }
  0x1d   :  { %1038 = vmatmul.mubr.msk.f32.vlgmr.msra.gmra.mxu0 %vm95_vm0, %v72_v2  ;;  %v76_v8 = vld [vmem:[%s1515_s0 + $0x28] sm:$0xff]  ;;  %1061 = vmatprep.subr.bf16.mxu1 %v1160_v6  ;;  %v77_v9 = vld [vmem:[%s1515_s0 + $0x30] sm:$0xff]  ;;  %v78_v10 = vld [vmem:[%s1515_s0 + $0x38] sm:$0xff]  ;;  %vm558_vm8 = vcmask 1047559   ;;  %s1264_s25 = smov [#allocation8]  }
  0x1e   :  { %1040 = vmatprep.mubr.msk.f32.mxu0 %vm95_vm0, %v73_v3  ;;  %1062 = vmatpush3.bf16.msra.mxu1 %v1160_v6  ;;  %v1162_v11 = vld [vmem:[%s1518_s3 + $0x28] sm:$0xff]   ;;  %v79_v12 = vld [vmem:[%s1515_s0 + $0x40] sm:$0xff]  ;;  %v81_v15 = vld [vmem:[%s1515_s0 + $0x50] sm:$0xff]  ;;  %s912_s26 = sshll.u32 %s1264_s25, 4  ;;  %s913_s26 = int_to_ptr.vmem [resolvable:$true] %s912_s26 }
  0x1f   :  { %1063 = vmatprep.subr.bf16.mxu1 %v1161_v7  ;;  %v1163_v13 = vld [vmem:[%s1518_s3 + $0x20] sm:$0xff]   ;;  %v80_v14 = vld [vmem:[%s1515_s0 + $0x48] sm:$0xff]  ;;  %v1164_v16 = vld [vmem:[%s1518_s3 + $0x18] sm:$0xff]   ;;  %p1237_p11 = scmp.lt.s32.totalorder %s913_s26, %s913_s26 }
  0x20   :  { %v82_v17 = vld [vmem:[%s1515_s0 + $0x58] sm:$0xff]  ;;  %v83_v18 = vld [vmem:[%s1515_s0 + $0x60] sm:$0xff]  ;;  %v84_v19 = vld [vmem:[%s1515_s0 + $0x68] sm:$0xff] }
  0x21   :  { %1041 = vmatmul.mubr.msk.f32.gmra.mxu0 %vm95_vm0, %v74_v4  ;;  %v85_v20 = vld [vmem:[%s1515_s0 + $0x70] sm:$0xff]  ;;  %v86_v21 = vld [vmem:[%s1515_s0 + $0x78] sm:$0xff]  ;;  %v1166_v23 = vld [vmem:[%s1518_s3 + $0x8] sm:$0xff]  }
  0x22   :  { %1043 = vmatprep.mubr.msk.f32.mxu0 %vm95_vm0, %v75_v5  ;;  %1064 = vmatpush3.bf16.msra.mxu1 %v1161_v7  ;;  %v1165_v22 = vld [vmem:[%s1518_s3 + $0x10] sm:$0xff]   ;;  %v1167_v24 = vld [vmem:[%s1518_s3] sm:$0xff]  }
  0x23   :  { %1065 = vmatprep.subr.bf16.mxu1 %v1162_v11  ;;  %v922_v25 = vld [vmem:[%s1517_s2] ss:$0 sm:$0xff] }
  0x25   :  { %1044 = vmatmul.mubr.msk.f32.gmra.mxu0 %vm95_vm0, %v76_v8 }
  0x26   :  { %1046 = vmatprep.mubr.msk.f32.mxu0 %vm95_vm0, %v77_v9  ;;  %1066 = vmatpush3.bf16.msra.mxu1 %v1162_v11 }
  0x27   :  { %1067 = vmatprep.subr.bf16.mxu1 %v1163_v13 }
  0x29   :  { %1047 = vmatmul.mubr.msk.f32.gmra.mxu0 %vm95_vm0, %v78_v10 }
  0x2a   :  { %1049 = vmatprep.mubr.msk.f32.mxu0 %vm95_vm0, %v79_v12  ;;  %1068 = vmatpush3.bf16.msra.mxu1 %v1163_v13 }
  0x2b   :  { %1069 = vmatprep.subr.bf16.mxu1 %v1164_v16 }
  0x2d   :  { %1050 = vmatmul.mubr.msk.f32.gmra.mxu0 %vm95_vm0, %v80_v14 }
  0x2e   :  { %1052 = vmatprep.mubr.msk.f32.mxu0 %vm95_vm0, %v81_v15  ;;  %1070 = vmatpush3.bf16.msra.mxu1 %v1164_v16 }
  0x2f   :  { %1071 = vmatprep.subr.bf16.mxu1 %v1165_v22 }
  0x31   :  { %1053 = vmatmul.mubr.msk.f32.gmra.mxu0 %vm95_vm0, %v82_v17 }
  0x32   :  { %1055 = vmatprep.mubr.msk.f32.mxu0 %vm95_vm0, %v83_v18  ;;  %1072 = vmatpush3.bf16.msra.mxu1 %v1165_v22  ;;  %v1168_v18 = vld [vmem:[%s1520_s5 + $0x38] sm:$0xff]   ;;  %v1171_v22 = vld [vmem:[%s1520_s5 + $0x20] sm:$0xff]  }
  0x33   :  { %1073 = vmatprep.subr.bf16.mxu1 %v1166_v23 }
  0x35   :  { %1056 = vmatmul.mubr.msk.f32.gmra.mxu0 %vm95_vm0, %v84_v19  ;;  %v1262_v19 = vmov 0.0  }
  0x36   :  { %1058 = vmatprep.mubr.msk.f32.mxu0 %vm95_vm0, %v85_v20  ;;  %1074 = vmatpush3.bf16.msra.mxu1 %v1166_v23  ;;  %v1169_v20 = vld [vmem:[%s1520_s5 + $0x30] sm:$0xff]   ;;  %v1172_v23 = vld [vmem:[%s1520_s5 + $0x18] sm:$0xff]  }
  0x37   :  { %1075 = vmatprep.subr.bf16.mxu1 %v1167_v24  ;;  %1093 = vmatprep.subr.bf16.mxu0 %v1262_v19 }
  0x38   :  { %1094 = vmatpush3.bf16.msra.mxu0 %v1168_v18 }
  0x39   :  { %1059 = vmatmul.mubr.msk.f32.gmra.mxu0 %vm95_vm0, %v86_v21  ;;  %1095 = vmatprep.subr.bf16.mxu0 %v1262_v19  ;;  %v1170_v21 = vld [vmem:[%s1520_s5 + $0x28] sm:$0xff]  }
  0x3a   :  { %1076 = vmatpush3.bf16.msra.mxu1 %v1167_v24  ;;  %v1173_v24 = vld [vmem:[%s1520_s5 + $0x10] sm:$0xff]   ;;  %1109 = vmatprep.mubr.msk.bf16.mxu0 %vm1263_vm1, %v1262_v19 }
  0x3b   :  { %1113 = vmatprep.subr.bf16.mxu1 %v1262_v19 }
  0x3c   :  { %1096 = vmatpush3.bf16.msra.mxu0 %v1169_v20 }
  0x3d   :  { %1097 = vmatprep.subr.bf16.mxu0 %v1262_v19 }
  0x40   :  { %1098 = vmatpush3.bf16.msra.mxu0 %v1170_v21 }
  0x41   :  { %1099 = vmatprep.subr.bf16.mxu0 %v1262_v19 }
  0x44   :  { %1100 = vmatpush3.bf16.msra.mxu0 %v1171_v22 }
  0x45   :  { %1101 = vmatprep.subr.bf16.mxu0 %v1262_v19 }
  0x48   :  { %1102 = vmatpush3.bf16.msra.mxu0 %v1172_v23 }
  0x49   :  { %1103 = vmatprep.subr.bf16.mxu0 %v1262_v19 }
  0x4c   :  { %1104 = vmatpush3.bf16.msra.mxu0 %v1173_v24 }
  0x4d   :  { %1105 = vmatprep.subr.bf16.mxu0 %v1262_v19 }
  0xdd   :  { %v1039_v26 = vpop.f32.mrf.mxu0 }
  0xde   :  { %v216_v27 = vadd.f32 %v1039_v26, %v922_v25  ;;  %v1175_v26 = vld [vmem:[%s1520_s5] sm:$0xff]  }
  0xdf   :  { %v210_v28 = vpop.f32.mrf.mxu0 }
  0xe0   :  { %v211_v29 = vadd.f32 %v922_v25, %v210_v28  ;;  %v307_v31 = vmax.f32 %v216_v27, 0.0  ;;  %v1176_v27 = vld [vmem:[%s1522_s7 + $0x38] sm:$0xff]   ;;  %v1177_v28 = vld [vmem:[%s1522_s7 + $0x30] sm:$0xff]  }
  0xe1   :  { %v1042_v30 = vpop.f32.mrf.mxu0 }
  0xe2   :  { %v306_v32 = vmax.f32 %v211_v29, 0.0  ;;  %v226_v33 = vadd.f32 %v1042_v30, %v922_v25  ;;  %v1178_v29 = vld [vmem:[%s1522_s7 + $0x28] sm:$0xff]   ;;  %v1179_v30 = vld [vmem:[%s1522_s7 + $0x20] sm:$0xff]  }
  0xe3   :  { %v220_v34 = vpop.f32.mrf.mxu0 }
  0xe4   :  { %v221_v35 = vadd.f32 %v922_v25, %v220_v34  ;;  %v322_v36 = vpack.c.bf16 %v307_v31, %v306_v32  ;;  %v309_v38 = vmax.f32 %v226_v33, 0.0  ;;  %v1180_v31 = vld [vmem:[%s1522_s7 + $0x18] sm:$0xff]   ;;  %v1181_v32 = vld [vmem:[%s1522_s7 + $0x10] sm:$0xff]   ;;  %v1182_v33 = vld [vmem:[%s1522_s7 + $0x8] sm:$0xff]  }
  0xe5   :  { %v1045_v37 = vpop.f32.mrf.mxu0 }
  0xe6   :  { %v308_v39 = vmax.f32 %v221_v35, 0.0  ;;  %v236_v40 = vadd.f32 %v1045_v37, %v922_v25  ;;  %1077 = vmatprep.mubr.bf16.mxu1 %v322_v36  ;;  %v939_v37 = vld [vmem:[%s1519_s4] ss:$0 sm:$0xff] }
  0xe7   :  { %v230_v41 = vpop.f32.mrf.mxu0 }
  0xe8   :  { %v323_v42 = vpack.c.bf16 %v309_v38, %v308_v39  ;;  %v231_v43 = vadd.f32 %v922_v25, %v230_v41  ;;  %v311_v45 = vmax.f32 %v236_v40, 0.0 }
  0xe9   :  { %v1048_v44 = vpop.f32.mrf.mxu0 }
  0xea   :  { %v310_v46 = vmax.f32 %v231_v43, 0.0  ;;  %v246_v47 = vadd.f32 %v1048_v44, %v922_v25  ;;  %1078 = vmatmul.mubr.bf16.vlgmr.msra.gmra.mxu1 %v323_v42 }
  0xeb   :  { %v240_v48 = vpop.f32.mrf.mxu0  ;;  %1114 = vmatpush3.bf16.msra.mxu1 %v1176_v27 }
  0xec   :  { %v324_v49 = vpack.c.bf16 %v311_v45, %v310_v46  ;;  %v241_v50 = vadd.f32 %v922_v25, %v240_v48  ;;  %v313_v52 = vmax.f32 %v246_v47, 0.0  ;;  %1115 = vmatprep.subr.bf16.mxu1 %v1262_v19 }
  0xed   :  { %v1051_v51 = vpop.f32.mrf.mxu0 }
  0xee   :  { %v312_v53 = vmax.f32 %v241_v50, 0.0  ;;  %v256_v54 = vadd.f32 %v1051_v51, %v922_v25  ;;  %1081 = vmatprep.mubr.bf16.mxu1 %v324_v49 }
  0xef   :  { %v250_v55 = vpop.f32.mrf.mxu0  ;;  %1116 = vmatpush3.bf16.msra.mxu1 %v1177_v28 }
  0xf0   :  { %v325_v56 = vpack.c.bf16 %v313_v52, %v312_v53  ;;  %v251_v57 = vadd.f32 %v922_v25, %v250_v55  ;;  %v315_v59 = vmax.f32 %v256_v54, 0.0  ;;  %1117 = vmatprep.subr.bf16.mxu1 %v1262_v19 }
  0xf1   :  { %v1054_v58 = vpop.f32.mrf.mxu0 }
  0xf2   :  { %v314_v60 = vmax.f32 %v251_v57, 0.0  ;;  %v266_v61 = vadd.f32 %v1054_v58, %v922_v25  ;;  %1082 = vmatmul.mubr.bf16.gmra.mxu1 %v325_v56 }
  0xf3   :  { %v260_v62 = vpop.f32.mrf.mxu0  ;;  %1118 = vmatpush3.bf16.msra.mxu1 %v1178_v29 }
  0xf4   :  { %v326_v63 = vpack.c.bf16 %v315_v59, %v314_v60  ;;  %v261_v0 = vadd.f32 %v922_v25, %v260_v62  ;;  %v317_v2 = vmax.f32 %v266_v61, 0.0  ;;  %1119 = vmatprep.subr.bf16.mxu1 %v1262_v19 }
  0xf5   :  { %v1057_v1 = vpop.f32.mrf.mxu0 }
  0xf6   :  { %v316_v3 = vmax.f32 %v261_v0, 0.0  ;;  %v276_v4 = vadd.f32 %v1057_v1, %v922_v25  ;;  %1085 = vmatprep.mubr.bf16.mxu1 %v326_v63 }
  0xf7   :  { %v270_v5 = vpop.f32.mrf.mxu0  ;;  %1120 = vmatpush3.bf16.msra.mxu1 %v1179_v30 }
  0xf8   :  { %v327_v6 = vpack.c.bf16 %v317_v2, %v316_v3  ;;  %v271_v7 = vadd.f32 %v922_v25, %v270_v5  ;;  %v319_v9 = vmax.f32 %v276_v4, 0.0  ;;  %1121 = vmatprep.subr.bf16.mxu1 %v1262_v19 }
  0xf9   :  { %v1060_v8 = vpop.f32.mrf.mxu0 }
  0xfa   :  { %v318_v10 = vmax.f32 %v271_v7, 0.0  ;;  %v286_v11 = vadd.f32 %v1060_v8, %v922_v25  ;;  %1086 = vmatmul.mubr.bf16.gmra.mxu1 %v327_v6 }
  0xfb   :  { %v280_v12 = vpop.f32.mrf.mxu0  ;;  %1122 = vmatpush3.bf16.msra.mxu1 %v1180_v31 }
  0xfc   :  { %v328_v13 = vpack.c.bf16 %v319_v9, %v318_v10  ;;  %v281_v14 = vadd.f32 %v922_v25, %v280_v12  ;;  %v321_v15 = vmax.f32 %v286_v11, 0.0  ;;  %v1174_v25 = vld [vmem:[%s1520_s5 + $0x8] sm:$0xff]   ;;  %1123 = vmatprep.subr.bf16.mxu1 %v1262_v19 }
  0xfd   :  { %1106 = vmatpush3.bf16.msra.mxu0 %v1174_v25 }
  0xfe   :  { %v320_v16 = vmax.f32 %v281_v14, 0.0  ;;  %1089 = vmatprep.mubr.bf16.mxu1 %v328_v13  ;;  %1107 = vmatprep.subr.bf16.mxu0 %v1262_v19 }
  0xff   :  { %1124 = vmatpush3.bf16.msra.mxu1 %v1181_v32 }
 0x100   :  { %v329_v17 = vpack.c.bf16 %v321_v15, %v320_v16  ;;  %1125 = vmatprep.subr.bf16.mxu1 %v1262_v19 }
 0x101   :  { %1108 = vmatpush3.bf16.msra.mxu0 %v1175_v26 }
 0x102   :  { %1090 = vmatmul.mubr.bf16.gmra.mxu1 %v329_v17  ;;  %1133 = vmatprep.subr.bf16.mxu0 %v1262_v19 }
 0x103   :  { %1129 = vmatprep.mubr.msk.bf16.mxu1 %vm1263_vm1, %v1262_v19  ;;  %1126 = vmatpush3.bf16.msra.mxu1 %v1182_v33 }
 0x104   :  { %1127 = vmatprep.subr.bf16.mxu1 %v1262_v19 }
 0x1aa   :  { %v1079_v34 = vpop.f32.mrf.mxu1 }
 0x1ab   :  { %v427_v43 = vadd.f32 %v1079_v34, %v939_v37 }
 0x1ac   :  { %v418_v35 = vpop.f32.mrf.mxu1 }
 0x1ad   :  { %v419_v40 = vadd.f32 %v939_v37, %v418_v35 }
 0x1ae   :  { %v1080_v36 = vpop.f32.mrf.mxu1 }
 0x1af   :  { %v430_v41 = vadd.f32 %v1080_v36, %v939_v37 }
 0x1b0   :  { %v421_v38 = vpop.f32.mrf.mxu1 }
 0x1b1   :  { %v422_v39 = vadd.f32 %v939_v37, %v421_v38  ;;  %v489_v46 = vmax.f32 %v427_v43, %v430_v41 }
 0x1b2   :  { %v1083_v42 = vpop.f32.mrf.mxu1 }
 0x1b3   :  { %v482_v44 = vmax.f32 %v419_v40, %v422_v39  ;;  %v443_v50 = vadd.f32 %v1083_v42, %v939_v37  ;;  %v490_v54 = vrot.slane %v489_v46, 4 }
 0x1b4   :  { %v434_v45 = vpop.f32.mrf.mxu1 }
 0x1b5   :  { %v483_v49 = vrot.slane %v482_v44, 4  ;;  %v435_v52 = vadd.f32 %v939_v37, %v434_v45  ;;  %v491_v61 = vmax.f32 %v489_v46, %v490_v54 }
 0x1b6   :  { %v1084_v47 = vpop.f32.mrf.mxu1 }
 0x1b7   :  { %v446_v48 = vadd.f32 %v1084_v47, %v939_v37  ;;  %v484_v58 = vmax.f32 %v482_v44, %v483_v49  ;;  %v492_v7 = vrot.slane %v491_v61, 2 }
 0x1b8   :  { %v437_v51 = vpop.f32.mrf.mxu1 }
 0x1b9   :  { %v438_v53 = vadd.f32 %v939_v37, %v437_v51  ;;  %v503_v55 = vmax.f32 %v443_v50, %v446_v48  ;;  %v485_v3 = vrot.slane %v484_v58, 2  ;;  %v493_v17 = vmax.f32 %v491_v61, %v492_v7  ;;  %v1186_v7 = vld [vmem:[#allocation6 + $0x28] sm:$0xff]  }
 0x1ba   :  { %v1087_v56 = vpop.f32.mrf.mxu1 }
 0x1bb   :  { %v496_v57 = vmax.f32 %v435_v52, %v438_v53  ;;  %v504_v62 = vrot.slane %v503_v55, 4  ;;  %v459_v1 = vadd.f32 %v1087_v56, %v939_v37  ;;  %v486_v13 = vmax.f32 %v484_v58, %v485_v3 }
 0x1bc   :  { %v450_v59 = vpop.f32.mrf.mxu1  ;;  %v494_v32 = vrot.slane %v493_v17, 1 }
 0x1bd   :  { %v497_v60 = vrot.slane %v496_v57, 4  ;;  %v505_v8 = vmax.f32 %v503_v55, %v504_v62  ;;  %v451_v9 = vadd.f32 %v939_v37, %v450_v59  ;;  %v487_v25 = vrot.slane %v486_v13, 1 }
 0x1be   :  { %v1088_v63 = vpop.f32.mrf.mxu1  ;;  %v495_v44 = vmax.f32 %v493_v17, %v494_v32 }
 0x1bf   :  { %v498_v0 = vmax.f32 %v496_v57, %v497_v60  ;;  %v462_v2 = vadd.f32 %v1088_v63, %v939_v37  ;;  %v506_v18 = vrot.slane %v505_v8, 2  ;;  %v488_v39 = vmax.f32 %v486_v13, %v487_v25 }
 0x1c0   :  { %v453_v4 = vpop.f32.mrf.mxu1 }
 0x1c1   :  { %v499_v5 = vrot.slane %v498_v0, 2  ;;  %v517_v6 = vmax.f32 %v459_v1, %v462_v2  ;;  %v454_v10 = vadd.f32 %v939_v37, %v453_v4  ;;  %v507_v33 = vmax.f32 %v505_v8, %v506_v18  ;;  %v1183_v4 = vld [vmem:[%s1522_s7] sm:$0xff]   ;;  %v1187_v8 = vld [vmem:[#allocation6 + $0x20] sm:$0xff]  }
 0x1c2   :  { %v1091_v11 = vpop.f32.mrf.mxu1  ;;  %1128 = vmatpush3.bf16.msra.mxu1 %v1183_v4 }
 0x1c3   :  { %v518_v12 = vrot.slane %v517_v6, 4  ;;  %v510_v14 = vmax.f32 %v451_v9, %v454_v10  ;;  %v500_v16 = vmax.f32 %v498_v0, %v499_v5  ;;  %v475_v23 = vadd.f32 %v1091_v11, %v939_v37  ;;  %v1184_v5 = vld [vmem:[#allocation6 + $0x38] sm:$0xff]   ;;  %v1189_v10 = vld [vmem:[#allocation6 + $0x10] sm:$0xff]  }
 0x1c4   :  { %v466_v15 = vpop.f32.mrf.mxu1  ;;  %v508_v45 = vrot.slane %v507_v33, 1  ;;  %v1188_v9 = vld [vmem:[#allocation6 + $0x18] sm:$0xff]  }
 0x1c5   :  { %v519_v20 = vmax.f32 %v517_v6, %v518_v12  ;;  %v511_v21 = vrot.slane %v510_v14, 4  ;;  %v501_v28 = vrot.slane %v500_v16, 1  ;;  %v467_v29 = vadd.f32 %v939_v37, %v466_v15  ;;  %v1185_v6 = vld [vmem:[#allocation6 + $0x30] sm:$0xff]   ;;  %v948_v11 = vld [vmem:[%s1521_s6] ss:$0 sm:$0xff] }
 0x1c6   :  { %v1092_v22 = vpop.f32.mrf.mxu1  ;;  %v509_v54 = vmax.f32 %v507_v33, %v508_v45 }
 0x1c7   :  { %v478_v24 = vadd.f32 %v1092_v22, %v939_v37  ;;  %v512_v26 = vmax.f32 %v510_v14, %v511_v21  ;;  %v520_v34 = vrot.slane %v519_v20, 2  ;;  %v502_v41 = vmax.f32 %v500_v16, %v501_v28  ;;  %v1191_v21 = vld [vmem:[#allocation6] sm:$0xff]   ;;  %v957_v22 = vld [vmem:[%s1523_s8] ss:$0 sm:$0xff]  ;;  %s1232_s8 = scalar_lea.vmem %s913_s26, 128 }
 0x1c8   :  { %v469_v27 = vpop.f32.mrf.mxu1  ;;  %p1233_p10 = scmp.ne.s32.totalorder %s913_s26, %s1232_s8  ;;  %p1238_p12 = scmp.lt.s32.totalorder %s1232_s8, %s1232_s8 }
 0x1c9   :  { %v531_v30 = vmax.f32 %v475_v23, %v478_v24  ;;  %v470_v31 = vadd.f32 %v939_v37, %v469_v27  ;;  %v513_v35 = vrot.slane %v512_v26, 2  ;;  %v521_v46 = vmax.f32 %v519_v20, %v520_v34  ;;  %v1190_v20 = vld [vmem:[#allocation6 + $0x8] sm:$0xff]  }
 0x1ca   :  { %v547_v37 = vsel %vm546_vm2, %v495_v44, %v488_v39  ;;  %p1239_p13 = por %p1238_p12, %p1237_p11 }
 0x1cb   :  { %v532_v36 = vrot.slane %v531_v30, 4  ;;  %v524_v38 = vmax.f32 %v467_v29, %v470_v31  ;;  %v514_v40 = vmax.f32 %v512_v26, %v513_v35  ;;  %v549_v50 = vsel %vm548_vm3, %v502_v41, %v547_v37 }
 0x1cc   :  { %v522_v55 = vrot.slane %v521_v46, 1  ;;  %v551_v57 = vsel %vm550_vm4, %v509_v54, %v549_v50  ;;  %p1240_p0 = pnand %p1239_p13, %p1233_p10 }
 0x1cd   :  { %v533_v42 = vmax.f32 %v531_v30, %v532_v36  ;;  %v525_v43 = vrot.slane %v524_v38, 4  ;;  %v515_v47 = vrot.slane %v514_v40, 1  ;;  %v966_v30 = vld [vmem:[%s1525_s10] ss:$0 sm:$0xff] }
 0x1ce   :  { %v523_v61 = vmax.f32 %v521_v46, %v522_v55 }
 0x1cf   :  { %v534_v48 = vrot.slane %v533_v42, 2  ;;  %v526_v49 = vmax.f32 %v524_v38, %v525_v43  ;;  %v516_v51 = vmax.f32 %v514_v40, %v515_v47 }
 0x1d1   :  { %v535_v52 = vmax.f32 %v533_v42, %v534_v48  ;;  %v527_v53 = vrot.slane %v526_v49, 2  ;;  %v553_v59 = vsel %vm552_vm5, %v516_v51, %v551_v57 }
 0x1d2   :  { %v555_v0 = vsel %vm554_vm6, %v523_v61, %v553_v59 }
 0x1d3   :  { %v528_v56 = vmax.f32 %v526_v49, %v527_v53  ;;  %v536_v58 = vrot.slane %v535_v52, 1 }
 0x1d5   :  { %v529_v60 = vrot.slane %v528_v56, 1  ;;  %v537_v63 = vmax.f32 %v535_v52, %v536_v58 }
 0x1d7   :  { %v530_v62 = vmax.f32 %v528_v56, %v529_v60 }
 0x1d9   :  { %v557_v1 = vsel %vm556_vm7, %v530_v62, %v555_v0 }
 0x1da   :  { %v559_v2 = vsel %vm558_vm8, %v537_v63, %v557_v1 }
 0x1db   :  { %v584_v3 = vpack.c.bf16 %v559_v2, %v559_v2 }
 0x1dd   :  { %1110 = vmatmul.mubr.bf16.vlgmr.msra.gmra.mxu0 %v584_v3 }
 0x1de   :  { %1149 = vmatprep.mubr.msk.bf16.mxu0 %vm1263_vm1, %v1262_v19  ;;  %1134 = vmatpush3.bf16.msra.mxu0 %v1184_v5 }
 0x1df   :  { %1135 = vmatprep.subr.bf16.mxu0 %v1262_v19 }
 0x1e2   :  { %1136 = vmatpush3.bf16.msra.mxu0 %v1185_v6 }
 0x1e3   :  { %1137 = vmatprep.subr.bf16.mxu0 %v1262_v19 }
 0x1e6   :  { %1138 = vmatpush3.bf16.msra.mxu0 %v1186_v7 }
 0x1e7   :  { %1139 = vmatprep.subr.bf16.mxu0 %v1262_v19 }
 0x1ea   :  { %1140 = vmatpush3.bf16.msra.mxu0 %v1187_v8 }
 0x1eb   :  { %1141 = vmatprep.subr.bf16.mxu0 %v1262_v19 }
 0x1ee   :  { %1142 = vmatpush3.bf16.msra.mxu0 %v1188_v9 }
 0x1ef   :  { %1143 = vmatprep.subr.bf16.mxu0 %v1262_v19 }
 0x1f2   :  { %1144 = vmatpush3.bf16.msra.mxu0 %v1189_v10 }
 0x1f3   :  { %1145 = vmatprep.subr.bf16.mxu0 %v1262_v19 }
 0x1f6   :  { %1146 = vmatpush3.bf16.msra.mxu0 %v1190_v20 }
 0x1f7   :  { %1147 = vmatprep.subr.bf16.mxu0 %v1262_v19 }
 0x1fa   :  { %1148 = vmatpush3.bf16.msra.mxu0 %v1191_v21 }
 0x29d   :  { %v673_v12 = vpop.f32.mrf.mxu0 }
 0x29e   :  { %v674_v13 = vadd.f32 %v948_v11, %v673_v12 }
 0x29f   :  { %v1111_v14 = vpop.f32.mrf.mxu0 }
 0x2a0   :  { %v679_v15 = vmax.f32 %v674_v13, 0.0 }
 0x2a1   :  { %v676_v16 = vpop.f32.mrf.mxu0 }
 0x2a2   :  { %v697_v17 = vpack.c.bf16 %v679_v15, %v679_v15 }
 0x2a3   :  { %v1112_v18 = vpop.f32.mrf.mxu0 }
 0x2a4   :  { %1130 = vmatmul.mubr.bf16.vlgmr.msra.gmra.mxu1 %v697_v17 }
 0x364   :  { %v786_v23 = vpop.f32.mrf.mxu1 }
 0x365   :  { %v787_v24 = vadd.f32 %v957_v22, %v786_v23 }
 0x366   :  { %v1131_v25 = vpop.f32.mrf.mxu1 }
 0x367   :  { %v792_v26 = vmax.f32 %v787_v24, 0.0 }
 0x368   :  { %v789_v27 = vpop.f32.mrf.mxu1 }
 0x369   :  { %v810_v28 = vpack.c.bf16 %v792_v26, %v792_v26 }
 0x36a   :  { %v1132_v29 = vpop.f32.mrf.mxu1 }
 0x36b   :  { %1150 = vmatmul.mubr.bf16.vlgmr.msra.gmra.mxu0 %v810_v28 }
 0x42b   :  { %v899_v19 = vpop.f32.mrf.mxu0 }
 0x42c   :  { %v900_v31 = vadd.f32 %v966_v30, %v899_v19 }
 0x42d   :  { %v1151_v32 = vpop.f32.mrf.mxu0 }
 0x42e   :  { %905 = vst [vmem:[#allocation8] sm:$0xff] %v900_v31 }
 0x42f   :  { %v902_v33 = vpop.f32.mrf.mxu0 }
 0x430   :  { %1243 = shalt.err (!%p1240_p0)
}
 0x431   :  { %915 = dma.vmem_to_hbm [thread:$0]  %s913_s26, 128, %s1526_s11, [#allocation5]   ;;  %v1152_v34 = vpop.f32.mrf.mxu0 }
 0x432   :  { %1256 = dma.done.wait [#allocation5], 128  }
 0x433   :  { %1257 = vsyncadd [#allocation5], 4294967168 }
 0x434   :  { %919 = vsyncpa [#allocation4], 1 }
 0x435   :  { %920 = vsyncpa [#allocation7], 1 }
 0x436   :  { %921 = vsyncpa [#allocation5], 1 }

</bundles_post_ra>
